<compile_context>
chip_gen: v6e
topology: v6e:2x2x1
jax: 0.10.0
libtpu: 0.0.40
codegen_flags: <defaults>
</compile_context>

<pallas_src>
import jax
import jax.numpy as jnp
from jax.experimental import pallas as pl
from jax.experimental.pallas import tpu as pltpu


def _round_up(x, m):
    return ((x + m - 1) // m) * m


def _pad_to(a, shape):
    return jnp.pad(a, [(0, s - d) for d, s in zip(a.shape, shape)])


# ----------------------------- Pallas kernels ------------------------------ #
def _conv_gemm_relu_pool_kernel(a_ref, w_ref, b_ref, o_ref):
    # a_ref: (4, TM, Kp) bf16  -- 4 = the 2x2 pooling-window positions
    # w_ref: (Kp, 128)  bf16   -- resident across grid steps
    # b_ref: (1, 128)   f32    -- resident across grid steps
    # o_ref: (TM, 128)  f32    -- pooled + ReLU'd conv output tile
    w = w_ref[...]
    d0 = jnp.dot(a_ref[0], w, preferred_element_type=jnp.float32)
    d1 = jnp.dot(a_ref[1], w, preferred_element_type=jnp.float32)
    d2 = jnp.dot(a_ref[2], w, preferred_element_type=jnp.float32)
    d3 = jnp.dot(a_ref[3], w, preferred_element_type=jnp.float32)
    m = jnp.maximum(jnp.maximum(d0, d1), jnp.maximum(d2, d3))
    # max(relu(x_i + b)) == relu(max(x_i) + b): bias+ReLU after the pool is exact.
    o_ref[...] = jnp.maximum(m + b_ref[...], 0.0)


def _fc_chain_kernel(x_ref, w1_ref, b1_ref, w2_ref, b2_ref, w3_ref, b3_ref,
                     o_ref):
    # Fused fc1 -> ReLU -> fc2 -> ReLU -> fc3; intermediates stay in VMEM/vregs.
    h = jnp.dot(x_ref[...], w1_ref[...], preferred_element_type=jnp.float32)
    h = jnp.maximum(h + b1_ref[...], 0.0)
    h = jnp.dot(h.astype(jnp.bfloat16), w2_ref[...],
                preferred_element_type=jnp.float32)
    h = jnp.maximum(h + b2_ref[...], 0.0)
    h = jnp.dot(h.astype(jnp.bfloat16), w3_ref[...],
                preferred_element_type=jnp.float32)
    o_ref[...] = h + b3_ref[...]


# ------------------------------- glue (JAX) -------------------------------- #
def _im2col_pool_grouped(x, K):
    """x: (B,H,W,C) NHWC -> A: (4, B*POH*POW, C*K*K), window-grouped patches.

    A[wi, r, :] is the im2col row (column order ci,kh,kw) of the conv-output
    pixel at pooling-window position wi (= dh*2+dw) of pooled pixel r.
    """
    B, H, W, C = x.shape
    OH, OW = H - K + 1, W - K + 1
    POH, POW = OH // 2, OW // 2
    cols = []
    for kh in range(K):
        for kw in range(K):
            cols.append(x[:, kh:kh + OH, kw:kw + OW, :])   # (B, OH, OW, C)
    p = jnp.stack(cols, axis=0).reshape(K, K, B, OH, OW, C)
    p = p.transpose(2, 3, 4, 5, 0, 1)                      # (B,OH,OW,C,K,K)
    p = p.reshape(B, OH, OW, C * K * K)
    p = p.reshape(B, POH, 2, POW, 2, C * K * K)
    p = p.transpose(2, 4, 0, 1, 3, 5)                      # (2,2,B,POH,POW,CKK)
    return p.reshape(4, B * POH * POW, C * K * K), POH, POW


def conv_relu_pool(x_nhwc, w_oihw, b, K, *, tile_m=256):
    """conv(valid, stride 1) + bias + ReLU + 2x2 maxpool, fused in one kernel."""
    B = x_nhwc.shape[0]
    Cout = w_oihw.shape[0]
    A, POH, POW = _im2col_pool_grouped(x_nhwc, K)
    CKK = A.shape[-1]
    Kp = _round_up(CKK, 128)          # lane-dense K (75->128, 150->256)
    Np = 128                          # lane-dense N (unmasked stores)
    M = A.shape[1]
    tile_m = max(32, min(tile_m, _round_up(M, 32)))
    Mp = _round_up(M, tile_m)

    A = _pad_to(A, (4, Mp, Kp)).astype(jnp.bfloat16)
    Wm = _pad_to(w_oihw.reshape(Cout, CKK).T, (Kp, Np)).astype(jnp.bfloat16)
    bm = _pad_to(b.reshape(1, Cout), (1, Np)).astype(jnp.float32)

    out = pl.pallas_call(
        _conv_gemm_relu_pool_kernel,
        out_shape=jax.ShapeDtypeStruct((Mp, Np), jnp.float32),
        grid=(Mp // tile_m,),
        in_specs=[
            pl.BlockSpec((4, tile_m, Kp), lambda i: (0, i, 0)),
            pl.BlockSpec((Kp, Np), lambda i: (0, 0)),   # weights: resident
            pl.BlockSpec((1, Np), lambda i: (0, 0)),    # bias: resident
        ],
        out_specs=pl.BlockSpec((tile_m, Np), lambda i: (i, 0)),
        compiler_params=pltpu.CompilerParams(
            dimension_semantics=("parallel",)),
    )(A, Wm, bm)
    return out[:M, :Cout].reshape(B, POH, POW, Cout)


def fc_chain(x, w1, b1, w2, b2, w3, b3):
    """Fused fc1+ReLU -> fc2+ReLU -> fc3 in a single pallas_call."""
    B, K1 = x.shape
    N1, N2, N3 = w1.shape[0], w2.shape[0], w3.shape[0]
    K1p = _round_up(K1, 128)          # 400 -> 512
    Hp = 128                          # padded hidden / output width
    tile_b = min(256, _round_up(B, 16))
    Bp = _round_up(B, tile_b)

    xp = _pad_to(x, (Bp, K1p)).astype(jnp.bfloat16)
    w1p = _pad_to(w1.T, (K1p, Hp)).astype(jnp.bfloat16)
    w2p = _pad_to(w2.T, (Hp, Hp)).astype(jnp.bfloat16)
    w3p = _pad_to(w3.T, (Hp, Hp)).astype(jnp.bfloat16)
    b1p = _pad_to(b1.reshape(1, N1), (1, Hp)).astype(jnp.float32)
    b2p = _pad_to(b2.reshape(1, N2), (1, Hp)).astype(jnp.float32)
    b3p = _pad_to(b3.reshape(1, N3), (1, Hp)).astype(jnp.float32)

    resident2d = lambda shape: pl.BlockSpec(shape, lambda i: (0, 0))
    out = pl.pallas_call(
        _fc_chain_kernel,
        out_shape=jax.ShapeDtypeStruct((Bp, Hp), jnp.float32),
        grid=(Bp // tile_b,),
        in_specs=[
            pl.BlockSpec((tile_b, K1p), lambda i: (i, 0)),
            resident2d((K1p, Hp)), resident2d((1, Hp)),
            resident2d((Hp, Hp)), resident2d((1, Hp)),
            resident2d((Hp, Hp)), resident2d((1, Hp)),
        ],
        out_specs=pl.BlockSpec((tile_b, Hp), lambda i: (i, 0)),
        compiler_params=pltpu.CompilerParams(
            dimension_semantics=("parallel",)),
    )(xp, w1p, b1p, w2p, b2p, w3p, b3p)
    return out[:B, :N3]


# ------------------------------ model wiring ------------------------------- #
def init_params(key):
    # Deterministic PyTorch-style uniform(-1/sqrt(fan_in), 1/sqrt(fan_in)) init.
    def uniform(k, shape, fan_in):
        bound = 1.0 / float(fan_in) ** 0.5
        return jax.random.uniform(k, shape, jnp.float32, -bound, bound)

    ks = jax.random.split(key, 10)
    return {
        "conv1_w": uniform(ks[0], (6, 3, 5, 5), 3 * 25),
        "conv1_b": uniform(ks[1], (6,), 3 * 25),
        "conv2_w": uniform(ks[2], (16, 6, 5, 5), 6 * 25),
        "conv2_b": uniform(ks[3], (16,), 6 * 25),
        "fc1_w": uniform(ks[4], (120, 400), 400),
        "fc1_b": uniform(ks[5], (120,), 400),
        "fc2_w": uniform(ks[6], (84, 120), 120),
        "fc2_b": uniform(ks[7], (84,), 120),
        "fc3_w": uniform(ks[8], (10, 84), 84),
        "fc3_b": uniform(ks[9], (10,), 84),
    }


@jax.jit
def net_forward(params, x_nchw):
    x = x_nchw.transpose(0, 2, 3, 1)  # NCHW -> NHWC
    x = conv_relu_pool(x, params["conv1_w"], params["conv1_b"], 5)  # (B,14,14,6)
    x = conv_relu_pool(x, params["conv2_w"], params["conv2_b"], 5)  # (B,5,5,16)
    B = x.shape[0]
    x = x.transpose(0, 3, 1, 2).reshape(B, -1)  # NCHW-order flatten -> (B, 400)
    return fc_chain(x, params["fc1_w"], params["fc1_b"],
                    params["fc2_w"], params["fc2_b"],
                    params["fc3_w"], params["fc3_b"])           # (B, 10)


if __name__ == "__main__":
    key = jax.random.PRNGKey(0)
    pkey, xkey = jax.random.split(key)
    params = init_params(pkey)
    # Spatial size must be 32x32 so that 16*5*5 = 400 matches fc1; batch kept small.
    x = jax.random.normal(xkey, (2, 3, 32, 32), jnp.float32)
    out = jax.block_until_ready(net_forward(params, x))
    assert out.shape == (2, 10), out.shape
    assert bool(jnp.all(jnp.isfinite(out)))
    print("KERNEL_OK")
</pallas_src>

<mosaic_0001>
module attributes {stable_mosaic.version = 11 : i64} {
  func.func @_conv_gemm_relu_pool_kernel(%arg0: i32, %arg1: memref<4x256x128xbf16, #tpu.memory_space<vmem>>, %arg2: memref<128x128xbf16, #tpu.memory_space<vmem>>, %arg3: memref<1x128xf32, #tpu.memory_space<vmem>>, %arg4: memref<256x128xf32, #tpu.memory_space<vmem>>) attributes {dimension_semantics = [#tpu.dimension_semantics<parallel>], iteration_bounds = array<i64: 2>, scalar_prefetch = 0 : i64, scratch_operands = 0 : i64, tpu.core_type = #tpu.core_type<tc>, window_params = [{transform_indices = @transform_0, window_bounds = array<i64: 4, 256, 128>}, {pipeline_mode = #tpu.pipeline_mode<synchronous>, transform_indices = @transform_1, window_bounds = array<i64: 128, 128>}, {pipeline_mode = #tpu.pipeline_mode<synchronous>, transform_indices = @transform_2, window_bounds = array<i64: 1, 128>}, {transform_indices = @transform_3, window_bounds = array<i64: 256, 128>}]} {
    %c0 = arith.constant 0 : index
    %c0_0 = arith.constant 0 : index
    %0 = vector.load %arg2[%c0, %c0_0] : memref<128x128xbf16, #tpu.memory_space<vmem>>, vector<128x128xbf16>
    %c0_1 = arith.constant 0 : index
    %c0_2 = arith.constant 0 : index
    %c0_3 = arith.constant 0 : index
    %1 = vector.load %arg1[%c0_1, %c0_2, %c0_3] : memref<4x256x128xbf16, #tpu.memory_space<vmem>>, vector<1x256x128xbf16>
    %2 = vector.shape_cast %1 : vector<1x256x128xbf16> to vector<256x128xbf16>
    %cst = arith.constant dense<0.000000e+00> : vector<256x128xf32>
    %3 = tpu.matmul %2, %0, %cst {dimension_numbers = #tpu.dot_dimension_numbers<[1], [0], [0], [1], [0, 0, 1, 1], [], []>} : vector<256x128xbf16>, vector<128x128xbf16>, vector<256x128xf32> -> vector<256x128xf32>
    %c1 = arith.constant 1 : index
    %c0_4 = arith.constant 0 : index
    %c0_5 = arith.constant 0 : index
    %4 = vector.load %arg1[%c1, %c0_4, %c0_5] : memref<4x256x128xbf16, #tpu.memory_space<vmem>>, vector<1x256x128xbf16>
    %5 = vector.shape_cast %4 : vector<1x256x128xbf16> to vector<256x128xbf16>
    %cst_6 = arith.constant dense<0.000000e+00> : vector<256x128xf32>
    %6 = tpu.matmul %5, %0, %cst_6 {dimension_numbers = #tpu.dot_dimension_numbers<[1], [0], [0], [1], [0, 0, 1, 1], [], []>} : vector<256x128xbf16>, vector<128x128xbf16>, vector<256x128xf32> -> vector<256x128xf32>
    %c2 = arith.constant 2 : index
    %c0_7 = arith.constant 0 : index
    %c0_8 = arith.constant 0 : index
    %7 = vector.load %arg1[%c2, %c0_7, %c0_8] : memref<4x256x128xbf16, #tpu.memory_space<vmem>>, vector<1x256x128xbf16>
    %8 = vector.shape_cast %7 : vector<1x256x128xbf16> to vector<256x128xbf16>
    %cst_9 = arith.constant dense<0.000000e+00> : vector<256x128xf32>
    %9 = tpu.matmul %8, %0, %cst_9 {dimension_numbers = #tpu.dot_dimension_numbers<[1], [0], [0], [1], [0, 0, 1, 1], [], []>} : vector<256x128xbf16>, vector<128x128xbf16>, vector<256x128xf32> -> vector<256x128xf32>
    %c3 = arith.constant 3 : index
    %c0_10 = arith.constant 0 : index
    %c0_11 = arith.constant 0 : index
    %10 = vector.load %arg1[%c3, %c0_10, %c0_11] : memref<4x256x128xbf16, #tpu.memory_space<vmem>>, vector<1x256x128xbf16>
    %11 = vector.shape_cast %10 : vector<1x256x128xbf16> to vector<256x128xbf16>
    %cst_12 = arith.constant dense<0.000000e+00> : vector<256x128xf32>
    %12 = tpu.matmul %11, %0, %cst_12 {dimension_numbers = #tpu.dot_dimension_numbers<[1], [0], [0], [1], [0, 0, 1, 1], [], []>} : vector<256x128xbf16>, vector<128x128xbf16>, vector<256x128xf32> -> vector<256x128xf32>
    %13 = arith.maximumf %3, %6 : vector<256x128xf32>
    %14 = arith.maximumf %9, %12 : vector<256x128xf32>
    %15 = arith.maximumf %13, %14 : vector<256x128xf32>
    %c0_13 = arith.constant 0 : index
    %c0_14 = arith.constant 0 : index
    %16 = vector.load %arg3[%c0_13, %c0_14] : memref<1x128xf32, #tpu.memory_space<vmem>>, vector<1x128xf32>
    %17 = vector.broadcast %16 : vector<1x128xf32> to vector<256x128xf32>
    %18 = arith.addf %15, %17 : vector<256x128xf32>
    %cst_15 = arith.constant 0.000000e+00 : f32
    %19 = vector.broadcast %cst_15 : f32 to vector<256x128xf32>
    %20 = arith.maximumf %18, %19 : vector<256x128xf32>
    %c0_16 = arith.constant 0 : index
    %c0_17 = arith.constant 0 : index
    %21 = vector.load %arg4[%c0_16, %c0_17] : memref<256x128xf32, #tpu.memory_space<vmem>>, vector<256x128xf32>
    tpu.vector_store %arg4[%c0_16, %c0_17], %20 {strides = array<i32>} : memref<256x128xf32, #tpu.memory_space<vmem>>, vector<256x128xf32>,
    return
  }
  func.func @transform_0(%arg0: i32) -> (i32, i32, i32) {
    %c0_i32 = arith.constant 0 : i32
    %c0_i32_0 = arith.constant 0 : i32
    %c0_i32_1 = arith.constant 0 : i32
    return %c0_i32, %arg0, %c0_i32_0 : i32, i32, i32
  }
  func.func @transform_1(%arg0: i32) -> (i32, i32) {
    %c0_i32 = arith.constant 0 : i32
    %c0_i32_0 = arith.constant 0 : i32
    %c0_i32_1 = arith.constant 0 : i32
    return %c0_i32, %c0_i32_0 : i32, i32
  }
  func.func @transform_2(%arg0: i32) -> (i32, i32) {
    %c0_i32 = arith.constant 0 : i32
    %c0_i32_0 = arith.constant 0 : i32
    %c0_i32_1 = arith.constant 0 : i32
    return %c0_i32, %c0_i32_0 : i32, i32
  }
  func.func @transform_3(%arg0: i32) -> (i32, i32) {
    %c0_i32 = arith.constant 0 : i32
    %c0_i32_0 = arith.constant 0 : i32
    return %arg0, %c0_i32 : i32, i32
  }
}

module attributes {stable_mosaic.version = 11 : i64} {
  func.func @_conv_gemm_relu_pool_kernel(%arg0: i32, %arg1: memref<4x64x256xbf16, #tpu.memory_space<vmem>>, %arg2: memref<256x128xbf16, #tpu.memory_space<vmem>>, %arg3: memref<1x128xf32, #tpu.memory_space<vmem>>, %arg4: memref<64x128xf32, #tpu.memory_space<vmem>>) attributes {dimension_semantics = [#tpu.dimension_semantics<parallel>], iteration_bounds = array<i64: 1>, scalar_prefetch = 0 : i64, scratch_operands = 0 : i64, tpu.core_type = #tpu.core_type<tc>, window_params = [{transform_indices = @transform_0, window_bounds = array<i64: 4, 64, 256>}, {pipeline_mode = #tpu.pipeline_mode<synchronous>, transform_indices = @transform_1, window_bounds = array<i64: 256, 128>}, {pipeline_mode = #tpu.pipeline_mode<synchronous>, transform_indices = @transform_2, window_bounds = array<i64: 1, 128>}, {transform_indices = @transform_3, window_bounds = array<i64: 64, 128>}]} {
    %c0 = arith.constant 0 : index
    %c0_0 = arith.constant 0 : index
    %0 = vector.load %arg2[%c0, %c0_0] : memref<256x128xbf16, #tpu.memory_space<vmem>>, vector<256x128xbf16>
    %c0_1 = arith.constant 0 : index
    %c0_2 = arith.constant 0 : index
    %c0_3 = arith.constant 0 : index
    %1 = vector.load %arg1[%c0_1, %c0_2, %c0_3] : memref<4x64x256xbf16, #tpu.memory_space<vmem>>, vector<1x64x256xbf16>
    %2 = vector.shape_cast %1 : vector<1x64x256xbf16> to vector<64x256xbf16>
    %cst = arith.constant dense<0.000000e+00> : vector<64x128xf32>
    %3 = tpu.matmul %2, %0, %cst {dimension_numbers = #tpu.dot_dimension_numbers<[1], [0], [0], [1], [0, 0, 1, 1], [], []>} : vector<64x256xbf16>, vector<256x128xbf16>, vector<64x128xf32> -> vector<64x128xf32>
    %c1 = arith.constant 1 : index
    %c0_4 = arith.constant 0 : index
    %c0_5 = arith.constant 0 : index
    %4 = vector.load %arg1[%c1, %c0_4, %c0_5] : memref<4x64x256xbf16, #tpu.memory_space<vmem>>, vector<1x64x256xbf16>
    %5 = vector.shape_cast %4 : vector<1x64x256xbf16> to vector<64x256xbf16>
    %cst_6 = arith.constant dense<0.000000e+00> : vector<64x128xf32>
    %6 = tpu.matmul %5, %0, %cst_6 {dimension_numbers = #tpu.dot_dimension_numbers<[1], [0], [0], [1], [0, 0, 1, 1], [], []>} : vector<64x256xbf16>, vector<256x128xbf16>, vector<64x128xf32> -> vector<64x128xf32>
    %c2 = arith.constant 2 : index
    %c0_7 = arith.constant 0 : index
    %c0_8 = arith.constant 0 : index
    %7 = vector.load %arg1[%c2, %c0_7, %c0_8] : memref<4x64x256xbf16, #tpu.memory_space<vmem>>, vector<1x64x256xbf16>
    %8 = vector.shape_cast %7 : vector<1x64x256xbf16> to vector<64x256xbf16>
    %cst_9 = arith.constant dense<0.000000e+00> : vector<64x128xf32>
    %9 = tpu.matmul %8, %0, %cst_9 {dimension_numbers = #tpu.dot_dimension_numbers<[1], [0], [0], [1], [0, 0, 1, 1], [], []>} : vector<64x256xbf16>, vector<256x128xbf16>, vector<64x128xf32> -> vector<64x128xf32>
    %c3 = arith.constant 3 : index
    %c0_10 = arith.constant 0 : index
    %c0_11 = arith.constant 0 : index
    %10 = vector.load %arg1[%c3, %c0_10, %c0_11] : memref<4x64x256xbf16, #tpu.memory_space<vmem>>, vector<1x64x256xbf16>
    %11 = vector.shape_cast %10 : vector<1x64x256xbf16> to vector<64x256xbf16>
    %cst_12 = arith.constant dense<0.000000e+00> : vector<64x128xf32>
    %12 = tpu.matmul %11, %0, %cst_12 {dimension_numbers = #tpu.dot_dimension_numbers<[1], [0], [0], [1], [0, 0, 1, 1], [], []>} : vector<64x256xbf16>, vector<256x128xbf16>, vector<64x128xf32> -> vector<64x128xf32>
    %13 = arith.maximumf %3, %6 : vector<64x128xf32>
    %14 = arith.maximumf %9, %12 : vector<64x128xf32>
    %15 = arith.maximumf %13, %14 : vector<64x128xf32>
    %c0_13 = arith.constant 0 : index
    %c0_14 = arith.constant 0 : index
    %16 = vector.load %arg3[%c0_13, %c0_14] : memref<1x128xf32, #tpu.memory_space<vmem>>, vector<1x128xf32>
    %17 = vector.broadcast %16 : vector<1x128xf32> to vector<64x128xf32>
    %18 = arith.addf %15, %17 : vector<64x128xf32>
    %cst_15 = arith.constant 0.000000e+00 : f32
    %19 = vector.broadcast %cst_15 : f32 to vector<64x128xf32>
    %20 = arith.maximumf %18, %19 : vector<64x128xf32>
    %c0_16 = arith.constant 0 : index
    %c0_17 = arith.constant 0 : index
    %21 = vector.load %arg4[%c0_16, %c0_17] : memref<64x128xf32, #tpu.memory_space<vmem>>, vector<64x128xf32>
    tpu.vector_store %arg4[%c0_16, %c0_17], %20 {strides = array<i32>} : memref<64x128xf32, #tpu.memory_space<vmem>>, vector<64x128xf32>,
    return
  }
  func.func @transform_0(%arg0: i32) -> (i32, i32, i32) {
    %c0_i32 = arith.constant 0 : i32
    %c0_i32_0 = arith.constant 0 : i32
    %c0_i32_1 = arith.constant 0 : i32
    return %c0_i32, %arg0, %c0_i32_0 : i32, i32, i32
  }
  func.func @transform_1(%arg0: i32) -> (i32, i32) {
    %c0_i32 = arith.constant 0 : i32
    %c0_i32_0 = arith.constant 0 : i32
    %c0_i32_1 = arith.constant 0 : i32
    return %c0_i32, %c0_i32_0 : i32, i32
  }
  func.func @transform_2(%arg0: i32) -> (i32, i32) {
    %c0_i32 = arith.constant 0 : i32
    %c0_i32_0 = arith.constant 0 : i32
    %c0_i32_1 = arith.constant 0 : i32
    return %c0_i32, %c0_i32_0 : i32, i32
  }
  func.func @transform_3(%arg0: i32) -> (i32, i32) {
    %c0_i32 = arith.constant 0 : i32
    %c0_i32_0 = arith.constant 0 : i32
    return %arg0, %c0_i32 : i32, i32
  }
}

module attributes {stable_mosaic.version = 11 : i64} {
  func.func @_fc_chain_kernel(%arg0: i32, %arg1: memref<16x512xbf16, #tpu.memory_space<vmem>>, %arg2: memref<512x128xbf16, #tpu.memory_space<vmem>>, %arg3: memref<1x128xf32, #tpu.memory_space<vmem>>, %arg4: memref<128x128xbf16, #tpu.memory_space<vmem>>, %arg5: memref<1x128xf32, #tpu.memory_space<vmem>>, %arg6: memref<128x128xbf16, #tpu.memory_space<vmem>>, %arg7: memref<1x128xf32, #tpu.memory_space<vmem>>, %arg8: memref<16x128xf32, #tpu.memory_space<vmem>>) attributes {dimension_semantics = [#tpu.dimension_semantics<parallel>], iteration_bounds = array<i64: 1>, scalar_prefetch = 0 : i64, scratch_operands = 0 : i64, tpu.core_type = #tpu.core_type<tc>, window_params = [{transform_indices = @transform_0, window_bounds = array<i64: 16, 512>}, {pipeline_mode = #tpu.pipeline_mode<synchronous>, transform_indices = @transform_1, window_bounds = array<i64: 512, 128>}, {pipeline_mode = #tpu.pipeline_mode<synchronous>, transform_indices = @transform_2, window_bounds = array<i64: 1, 128>}, {pipeline_mode = #tpu.pipeline_mode<synchronous>, transform_indices = @transform_3, window_bounds = array<i64: 128, 128>}, {pipeline_mode = #tpu.pipeline_mode<synchronous>, transform_indices = @transform_4, window_bounds = array<i64: 1, 128>}, {pipeline_mode = #tpu.pipeline_mode<synchronous>, transform_indices = @transform_5, window_bounds = array<i64: 128, 128>}, {pipeline_mode = #tpu.pipeline_mode<synchronous>, transform_indices = @transform_6, window_bounds = array<i64: 1, 128>}, {transform_indices = @transform_7, window_bounds = array<i64: 16, 128>}]} {
    %c0 = arith.constant 0 : index
    %c0_0 = arith.constant 0 : index
    %0 = vector.load %arg1[%c0, %c0_0] : memref<16x512xbf16, #tpu.memory_space<vmem>>, vector<16x512xbf16>
    %c0_1 = arith.constant 0 : index
    %c0_2 = arith.constant 0 : index
    %1 = vector.load %arg2[%c0_1, %c0_2] : memref<512x128xbf16, #tpu.memory_space<vmem>>, vector<512x128xbf16>
    %cst = arith.constant dense<0.000000e+00> : vector<16x128xf32>
    %2 = tpu.matmul %0, %1, %cst {dimension_numbers = #tpu.dot_dimension_numbers<[1], [0], [0], [1], [0, 0, 1, 1], [], []>} : vector<16x512xbf16>, vector<512x128xbf16>, vector<16x128xf32> -> vector<16x128xf32>
    %c0_3 = arith.constant 0 : index
    %c0_4 = arith.constant 0 : index
    %3 = vector.load %arg3[%c0_3, %c0_4] : memref<1x128xf32, #tpu.memory_space<vmem>>, vector<1x128xf32>
    %4 = vector.broadcast %3 : vector<1x128xf32> to vector<16x128xf32>
    %5 = arith.addf %2, %4 : vector<16x128xf32>
    %cst_5 = arith.constant 0.000000e+00 : f32
    %6 = vector.broadcast %cst_5 : f32 to vector<16x128xf32>
    %7 = arith.maximumf %5, %6 : vector<16x128xf32>
    %8 = arith.truncf %7 : vector<16x128xf32> to vector<16x128xbf16>
    %c0_6 = arith.constant 0 : index
    %c0_7 = arith.constant 0 : index
    %9 = vector.load %arg4[%c0_6, %c0_7] : memref<128x128xbf16, #tpu.memory_space<vmem>>, vector<128x128xbf16>
    %cst_8 = arith.constant dense<0.000000e+00> : vector<16x128xf32>
    %10 = tpu.matmul %8, %9, %cst_8 {dimension_numbers = #tpu.dot_dimension_numbers<[1], [0], [0], [1], [0, 0, 1, 1], [], []>} : vector<16x128xbf16>, vector<128x128xbf16>, vector<16x128xf32> -> vector<16x128xf32>
    %c0_9 = arith.constant 0 : index
    %c0_10 = arith.constant 0 : index
    %11 = vector.load %arg5[%c0_9, %c0_10] : memref<1x128xf32, #tpu.memory_space<vmem>>, vector<1x128xf32>
    %12 = vector.broadcast %11 : vector<1x128xf32> to vector<16x128xf32>
    %13 = arith.addf %10, %12 : vector<16x128xf32>
    %cst_11 = arith.constant 0.000000e+00 : f32
    %14 = vector.broadcast %cst_11 : f32 to vector<16x128xf32>
    %15 = arith.maximumf %13, %14 : vector<16x128xf32>
    %16 = arith.truncf %15 : vector<16x128xf32> to vector<16x128xbf16>
    %c0_12 = arith.constant 0 : index
    %c0_13 = arith.constant 0 : index
    %17 = vector.load %arg6[%c0_12, %c0_13] : memref<128x128xbf16, #tpu.memory_space<vmem>>, vector<128x128xbf16>
    %cst_14 = arith.constant dense<0.000000e+00> : vector<16x128xf32>
    %18 = tpu.matmul %16, %17, %cst_14 {dimension_numbers = #tpu.dot_dimension_numbers<[1], [0], [0], [1], [0, 0, 1, 1], [], []>} : vector<16x128xbf16>, vector<128x128xbf16>, vector<16x128xf32> -> vector<16x128xf32>
    %c0_15 = arith.constant 0 : index
    %c0_16 = arith.constant 0 : index
    %19 = vector.load %arg7[%c0_15, %c0_16] : memref<1x128xf32, #tpu.memory_space<vmem>>, vector<1x128xf32>
    %20 = vector.broadcast %19 : vector<1x128xf32> to vector<16x128xf32>
    %21 = arith.addf %18, %20 : vector<16x128xf32>
    %c0_17 = arith.constant 0 : index
    %c0_18 = arith.constant 0 : index
    %22 = vector.load %arg8[%c0_17, %c0_18] : memref<16x128xf32, #tpu.memory_space<vmem>>, vector<16x128xf32>
    tpu.vector_store %arg8[%c0_17, %c0_18], %21 {strides = array<i32>} : memref<16x128xf32, #tpu.memory_space<vmem>>, vector<16x128xf32>,
    return
  }
  func.func @transform_0(%arg0: i32) -> (i32, i32) {
    %c0_i32 = arith.constant 0 : i32
    %c0_i32_0 = arith.constant 0 : i32
    return %arg0, %c0_i32 : i32, i32
  }
  func.func @transform_1(%arg0: i32) -> (i32, i32) {
    %c0_i32 = arith.constant 0 : i32
    %c0_i32_0 = arith.constant 0 : i32
    %c0_i32_1 = arith.constant 0 : i32
    return %c0_i32, %c0_i32_0 : i32, i32
  }
  func.func @transform_2(%arg0: i32) -> (i32, i32) {
    %c0_i32 = arith.constant 0 : i32
    %c0_i32_0 = arith.constant 0 : i32
    %c0_i32_1 = arith.constant 0 : i32
    return %c0_i32, %c0_i32_0 : i32, i32
  }
  func.func @transform_3(%arg0: i32) -> (i32, i32) {
    %c0_i32 = arith.constant 0 : i32
    %c0_i32_0 = arith.constant 0 : i32
    %c0_i32_1 = arith.constant 0 : i32
    return %c0_i32, %c0_i32_0 : i32, i32
  }
  func.func @transform_4(%arg0: i32) -> (i32, i32) {
    %c0_i32 = arith.constant 0 : i32
    %c0_i32_0 = arith.constant 0 : i32
    %c0_i32_1 = arith.constant 0 : i32
    return %c0_i32, %c0_i32_0 : i32, i32
  }
  func.func @transform_5(%arg0: i32) -> (i32, i32) {
    %c0_i32 = arith.constant 0 : i32
    %c0_i32_0 = arith.constant 0 : i32
    %c0_i32_1 = arith.constant 0 : i32
    return %c0_i32, %c0_i32_0 : i32, i32
  }
  func.func @transform_6(%arg0: i32) -> (i32, i32) {
    %c0_i32 = arith.constant 0 : i32
    %c0_i32_0 = arith.constant 0 : i32
    %c0_i32_1 = arith.constant 0 : i32
    return %c0_i32, %c0_i32_0 : i32, i32
  }
  func.func @transform_7(%arg0: i32) -> (i32, i32) {
    %c0_i32 = arith.constant 0 : i32
    %c0_i32_0 = arith.constant 0 : i32
    return %arg0, %c0_i32 : i32, i32
  }
}

</mosaic_0001>

<bundles_post_ra>
// kernel: net_forward.3
= control target key start
LH: loop header
LB: loop body
LE: loop exit
PB: predicated region body
PF: predicated region fallthrough
CT: control target
= control target key end

     0   :  { %s2821_s12 = smov 0   ;;  %s2823_s13 = smov 0   ;;  %s3514_s0 = inlined_call_operand.vmem [shape: bf16[4,512,128], index: 0, kind: input, shape index: {}]   ;;  %s3515_s1 = inlined_call_operand.vmem [shape: bf16[128,128], index: 1, kind: input, shape index: {}]   ;;  %s3516_s2 = inlined_call_operand.vmem [shape: f32[1,128], index: 2, kind: input, shape index: {}]   ;;  %s3517_s3 = inlined_call_operand.vmem [shape: f32[512,128], index: 3, kind: output, shape index: {}]  }
   0x1   :  { %s2825_s14 = smov 0  }
   0x2 LB: > { %s2210_s15 = sadd.s32 4294967295, %s2799_s14   ;;  %s2838_s16 = sadd.s32 1, %s2799_s14   ;;  %s2799_s14 = sphi %s2825_s14, %s3597_s14   ;;  %s2795_s13 = sphi %s2823_s13, %s3596_s13   ;;  %s2791_s12 = sphi %s2821_s12, %s3595_s12  }
   0x3   : > { %s17_s17 = ssub.s32 %s2799_s14, %s2838_s16  ;;  %s20_s18 = sadd.s32 1, %s2795_s13 }
   0x4   : > { %p18_p0 = scmp.eq.s32.totalorder %s17_s17, 0  ;;  %p27_p1 = scmp.ne.s32.totalorder %s2795_s13, %s2791_s12 }
   0x5   : > { %p28_p2 = scmp.eq.s32.totalorder %s2799_s14, 0  ;;  %p2213_p4 = scmp.ge.s32.totalorder %s2799_s14, 2 }
   0x6   : > { %s2847_s19 = scalar_select %p18_p0, %s2795_s13, %s20_s18  }
   0x7   : > { %p29_p3 = por %p28_p2, %p27_p1  ;;  %127 = sbr.rel (%p2213_p4) target bundleno = 48 (0x30), region = 24 }
   0xc   : > { %130 = sbr.rel (!%p29_p3) target bundleno = 48 (0x30), region = 28  ;;  %s132_s20 = sand.u32 (%p29_p3), 1, %s2795_s13  }
   0xd   : > { %s2392_s21 = sshll.u32 (%p29_p3), %s2799_s14, 7  ;;  %s2214_s22 = sshll.u32 (%p29_p3), %s132_s20, 9 }
   0xe   : > { %s2855_s25 = scalar_lea.vmem (%p29_p3), %s3514_s0, %s2392_s21  ;;  %s2860_s26 = scalar_lea.vmem (%p29_p3), [#allocation2], %s2214_s22 }
   0xf   : > { %v154_v0 = vld [vmem:[%s2855_s25] sm:$0xff] (%p29_p3)   ;;  %v158_v1 = vld [vmem:[%s2855_s25 + $0x8] sm:$0xff] (%p29_p3)   ;;  %v162_v2 = vld [vmem:[%s2855_s25 + $0x10] sm:$0xff] (%p29_p3)  }
  0x10   : > { %155 = vst [vmem:[%s2860_s26] sm:$0xff] (%p29_p3), %v154_v0   ;;  %159 = vst [vmem:[%s2860_s26 + $0x8] sm:$0xff] (%p29_p3), %v158_v1   ;;  %v166_v3 = vld [vmem:[%s2855_s25 + $0x18] sm:$0xff] (%p29_p3)   ;;  %v170_v4 = vld [vmem:[%s2855_s25 + $0x20] sm:$0xff] (%p29_p3)  }
  0x11   : > { %163 = vst [vmem:[%s2860_s26 + $0x10] sm:$0xff] %v162_v2   ;;  %v174_v5 = vld [vmem:[%s2855_s25 + $0x28] sm:$0xff]   ;;  %167 = vst [vmem:[%s2860_s26 + $0x18] sm:$0xff] %v166_v3   ;;  %v178_v6 = vld [vmem:[%s2855_s25 + $0x30] sm:$0xff]  }
  0x12   : > { %171 = vst [vmem:[%s2860_s26 + $0x20] sm:$0xff] %v170_v4   ;;  %175 = vst [vmem:[%s2860_s26 + $0x28] sm:$0xff] %v174_v5   ;;  %v182_v7 = vld [vmem:[%s2855_s25 + $0x38] sm:$0xff]   ;;  %v186_v8 = vld [vmem:[%s2855_s25 + $0x40] sm:$0xff]  }
  0x13   : > { %179 = vst [vmem:[%s2860_s26 + $0x30] sm:$0xff] %v178_v6   ;;  %183 = vst [vmem:[%s2860_s26 + $0x38] sm:$0xff] %v182_v7   ;;  %v190_v9 = vld [vmem:[%s2855_s25 + $0x48] sm:$0xff]   ;;  %v194_v10 = vld [vmem:[%s2855_s25 + $0x50] sm:$0xff]  }
  0x14   : > { %187 = vst [vmem:[%s2860_s26 + $0x40] sm:$0xff] %v186_v8   ;;  %v198_v11 = vld [vmem:[%s2855_s25 + $0x58] sm:$0xff]   ;;  %191 = vst [vmem:[%s2860_s26 + $0x48] sm:$0xff] %v190_v9   ;;  %v202_v12 = vld [vmem:[%s2855_s25 + $0x60] sm:$0xff]  }
  0x15   : > { %195 = vst [vmem:[%s2860_s26 + $0x50] sm:$0xff] %v194_v10   ;;  %199 = vst [vmem:[%s2860_s26 + $0x58] sm:$0xff] %v198_v11   ;;  %v206_v13 = vld [vmem:[%s2855_s25 + $0x68] sm:$0xff]   ;;  %v210_v14 = vld [vmem:[%s2855_s25 + $0x70] sm:$0xff]  }
  0x16   : > { %203 = vst [vmem:[%s2860_s26 + $0x60] sm:$0xff] %v202_v12   ;;  %207 = vst [vmem:[%s2860_s26 + $0x68] sm:$0xff] %v206_v13   ;;  %v214_v15 = vld [vmem:[%s2855_s25 + $0x78] sm:$0xff]   ;;  %v218_v16 = vld [vmem:[%s2855_s25 + $0x100] sm:$0xff]  }
  0x17   : > { %211 = vst [vmem:[%s2860_s26 + $0x70] sm:$0xff] %v210_v14   ;;  %v222_v17 = vld [vmem:[%s2855_s25 + $0x108] sm:$0xff]   ;;  %215 = vst [vmem:[%s2860_s26 + $0x78] sm:$0xff] %v214_v15   ;;  %v226_v18 = vld [vmem:[%s2855_s25 + $0x110] sm:$0xff]  }
  0x18   : > { %219 = vst [vmem:[%s2860_s26 + $0x80] sm:$0xff] %v218_v16   ;;  %223 = vst [vmem:[%s2860_s26 + $0x88] sm:$0xff] %v222_v17   ;;  %v230_v19 = vld [vmem:[%s2855_s25 + $0x118] sm:$0xff]   ;;  %v234_v20 = vld [vmem:[%s2855_s25 + $0x120] sm:$0xff]  }
  0x19   : > { %227 = vst [vmem:[%s2860_s26 + $0x90] sm:$0xff] %v226_v18   ;;  %231 = vst [vmem:[%s2860_s26 + $0x98] sm:$0xff] %v230_v19   ;;  %v238_v21 = vld [vmem:[%s2855_s25 + $0x128] sm:$0xff]   ;;  %v242_v22 = vld [vmem:[%s2855_s25 + $0x130] sm:$0xff]  }
  0x1a   : > { %235 = vst [vmem:[%s2860_s26 + $0xa0] sm:$0xff] %v234_v20   ;;  %v246_v23 = vld [vmem:[%s2855_s25 + $0x138] sm:$0xff]   ;;  %239 = vst [vmem:[%s2860_s26 + $0xa8] sm:$0xff] %v238_v21   ;;  %v250_v24 = vld [vmem:[%s2855_s25 + $0x140] sm:$0xff]  }
  0x1b   : > { %243 = vst [vmem:[%s2860_s26 + $0xb0] sm:$0xff] %v242_v22   ;;  %247 = vst [vmem:[%s2860_s26 + $0xb8] sm:$0xff] %v246_v23   ;;  %v254_v25 = vld [vmem:[%s2855_s25 + $0x148] sm:$0xff]   ;;  %v258_v26 = vld [vmem:[%s2855_s25 + $0x150] sm:$0xff]  }
  0x1c   : > { %251 = vst [vmem:[%s2860_s26 + $0xc0] sm:$0xff] %v250_v24   ;;  %255 = vst [vmem:[%s2860_s26 + $0xc8] sm:$0xff] %v254_v25   ;;  %v262_v27 = vld [vmem:[%s2855_s25 + $0x158] sm:$0xff]   ;;  %v266_v28 = vld [vmem:[%s2855_s25 + $0x160] sm:$0xff]  }
  0x1d   : > { %259 = vst [vmem:[%s2860_s26 + $0xd0] sm:$0xff] %v258_v26   ;;  %v270_v29 = vld [vmem:[%s2855_s25 + $0x168] sm:$0xff]   ;;  %263 = vst [vmem:[%s2860_s26 + $0xd8] sm:$0xff] %v262_v27   ;;  %v274_v30 = vld [vmem:[%s2855_s25 + $0x170] sm:$0xff]  }
  0x1e   : > { %267 = vst [vmem:[%s2860_s26 + $0xe0] sm:$0xff] %v266_v28   ;;  %271 = vst [vmem:[%s2860_s26 + $0xe8] sm:$0xff] %v270_v29   ;;  %v278_v31 = vld [vmem:[%s2855_s25 + $0x178] sm:$0xff]   ;;  %v282_v32 = vld [vmem:[%s2855_s25 + $0x200] sm:$0xff]  }
  0x1f   : > { %275 = vst [vmem:[%s2860_s26 + $0xf0] sm:$0xff] %v274_v30   ;;  %279 = vst [vmem:[%s2860_s26 + $0xf8] sm:$0xff] %v278_v31   ;;  %v286_v33 = vld [vmem:[%s2855_s25 + $0x208] sm:$0xff]   ;;  %v290_v34 = vld [vmem:[%s2855_s25 + $0x210] sm:$0xff]  }
  0x20   : > { %283 = vst [vmem:[%s2860_s26 + $0x100] sm:$0xff] %v282_v32   ;;  %v294_v35 = vld [vmem:[%s2855_s25 + $0x218] sm:$0xff]   ;;  %287 = vst [vmem:[%s2860_s26 + $0x108] sm:$0xff] %v286_v33   ;;  %v298_v36 = vld [vmem:[%s2855_s25 + $0x220] sm:$0xff]  }
  0x21   : > { %291 = vst [vmem:[%s2860_s26 + $0x110] sm:$0xff] %v290_v34   ;;  %295 = vst [vmem:[%s2860_s26 + $0x118] sm:$0xff] %v294_v35   ;;  %v302_v37 = vld [vmem:[%s2855_s25 + $0x228] sm:$0xff]   ;;  %v306_v38 = vld [vmem:[%s2855_s25 + $0x230] sm:$0xff]  }
  0x22   : > { %299 = vst [vmem:[%s2860_s26 + $0x120] sm:$0xff] %v298_v36   ;;  %303 = vst [vmem:[%s2860_s26 + $0x128] sm:$0xff] %v302_v37   ;;  %v310_v39 = vld [vmem:[%s2855_s25 + $0x238] sm:$0xff]   ;;  %v314_v40 = vld [vmem:[%s2855_s25 + $0x240] sm:$0xff]  }
  0x23   : > { %307 = vst [vmem:[%s2860_s26 + $0x130] sm:$0xff] %v306_v38   ;;  %v318_v41 = vld [vmem:[%s2855_s25 + $0x248] sm:$0xff]   ;;  %311 = vst [vmem:[%s2860_s26 + $0x138] sm:$0xff] %v310_v39   ;;  %v322_v42 = vld [vmem:[%s2855_s25 + $0x250] sm:$0xff]  }
  0x24   : > { %315 = vst [vmem:[%s2860_s26 + $0x140] sm:$0xff] %v314_v40   ;;  %319 = vst [vmem:[%s2860_s26 + $0x148] sm:$0xff] %v318_v41   ;;  %v326_v43 = vld [vmem:[%s2855_s25 + $0x258] sm:$0xff]   ;;  %v330_v44 = vld [vmem:[%s2855_s25 + $0x260] sm:$0xff]  }
  0x25   : > { %323 = vst [vmem:[%s2860_s26 + $0x150] sm:$0xff] %v322_v42   ;;  %327 = vst [vmem:[%s2860_s26 + $0x158] sm:$0xff] %v326_v43   ;;  %v334_v45 = vld [vmem:[%s2855_s25 + $0x268] sm:$0xff]   ;;  %v338_v46 = vld [vmem:[%s2855_s25 + $0x270] sm:$0xff]  }
  0x26   : > { %331 = vst [vmem:[%s2860_s26 + $0x160] sm:$0xff] %v330_v44   ;;  %v342_v47 = vld [vmem:[%s2855_s25 + $0x278] sm:$0xff]   ;;  %335 = vst [vmem:[%s2860_s26 + $0x168] sm:$0xff] %v334_v45   ;;  %v346_v48 = vld [vmem:[%s2855_s25 + $0x300] sm:$0xff]  }
  0x27   : > { %339 = vst [vmem:[%s2860_s26 + $0x170] sm:$0xff] %v338_v46   ;;  %343 = vst [vmem:[%s2860_s26 + $0x178] sm:$0xff] %v342_v47   ;;  %v350_v49 = vld [vmem:[%s2855_s25 + $0x308] sm:$0xff]   ;;  %v354_v50 = vld [vmem:[%s2855_s25 + $0x310] sm:$0xff]  }
  0x28   : > { %347 = vst [vmem:[%s2860_s26 + $0x180] sm:$0xff] %v346_v48   ;;  %351 = vst [vmem:[%s2860_s26 + $0x188] sm:$0xff] %v350_v49   ;;  %v358_v51 = vld [vmem:[%s2855_s25 + $0x318] sm:$0xff]   ;;  %v362_v52 = vld [vmem:[%s2855_s25 + $0x320] sm:$0xff]  }
  0x29   : > { %355 = vst [vmem:[%s2860_s26 + $0x190] sm:$0xff] %v354_v50   ;;  %v366_v53 = vld [vmem:[%s2855_s25 + $0x328] sm:$0xff]   ;;  %359 = vst [vmem:[%s2860_s26 + $0x198] sm:$0xff] %v358_v51   ;;  %v370_v54 = vld [vmem:[%s2855_s25 + $0x330] sm:$0xff]  }
  0x2a   : > { %363 = vst [vmem:[%s2860_s26 + $0x1a0] sm:$0xff] %v362_v52   ;;  %367 = vst [vmem:[%s2860_s26 + $0x1a8] sm:$0xff] %v366_v53   ;;  %v374_v55 = vld [vmem:[%s2855_s25 + $0x338] sm:$0xff]   ;;  %v378_v56 = vld [vmem:[%s2855_s25 + $0x340] sm:$0xff]  }
  0x2b   : > { %371 = vst [vmem:[%s2860_s26 + $0x1b0] sm:$0xff] %v370_v54   ;;  %375 = vst [vmem:[%s2860_s26 + $0x1b8] sm:$0xff] %v374_v55   ;;  %v382_v57 = vld [vmem:[%s2855_s25 + $0x348] sm:$0xff]   ;;  %v386_v58 = vld [vmem:[%s2855_s25 + $0x350] sm:$0xff]  }
  0x2c   : > { %379 = vst [vmem:[%s2860_s26 + $0x1c0] sm:$0xff] %v378_v56   ;;  %v390_v59 = vld [vmem:[%s2855_s25 + $0x358] sm:$0xff]   ;;  %383 = vst [vmem:[%s2860_s26 + $0x1c8] sm:$0xff] %v382_v57   ;;  %v394_v60 = vld [vmem:[%s2855_s25 + $0x360] sm:$0xff]  }
  0x2d   : > { %387 = vst [vmem:[%s2860_s26 + $0x1d0] sm:$0xff] %v386_v58   ;;  %391 = vst [vmem:[%s2860_s26 + $0x1d8] sm:$0xff] %v390_v59   ;;  %v398_v61 = vld [vmem:[%s2855_s25 + $0x368] sm:$0xff]   ;;  %v402_v62 = vld [vmem:[%s2855_s25 + $0x370] sm:$0xff]  }
  0x2e   : > { %395 = vst [vmem:[%s2860_s26 + $0x1e0] sm:$0xff] %v394_v60   ;;  %399 = vst [vmem:[%s2860_s26 + $0x1e8] sm:$0xff] %v398_v61   ;;  %v406_v63 = vld [vmem:[%s2855_s25 + $0x378] sm:$0xff]  }
  0x2f   : > { %403 = vst [vmem:[%s2860_s26 + $0x1f0] sm:$0xff] %v402_v62   ;;  %407 = vst [vmem:[%s2860_s26 + $0x1f8] sm:$0xff] %v406_v63  }
  0x30 PF: > { %p2217_p5 = scmp.ge.s32.totalorder %s2799_s14, 1  ;;  %p688_p6 = scmp.lt.s32.totalorder %s2799_s14, 3 }
  0x32   : > { %p689_p7 = pnand %p2217_p5, %p688_p6 }
  0x34   : > { %692 = sbr.rel (%p689_p7) target bundleno = 418 (0x1a2), region = 69 }
  0x39   : > { %v2705_v0 = vld [vmem:[%s3515_s1 + $0x38] sm:$0xff]   ;;  %s695_s29 = sand.u32 1, %s2791_s12   ;;  %v2706_v1 = vld [vmem:[%s3515_s1 + $0x30] sm:$0xff]   ;;  %v2999_v2 = vld [vmem:[%s3515_s1 + $0x28] sm:$0xff]   ;;  %s2219_s24 = sshll.u32 %s2210_s15, 5 }
  0x3a   : > { %2489 = vmatprep.subr.bf16.mxu0 %v2705_v0  ;;  %2537 = vmatprep.subr.bf16.mxu1 %v2705_v0  ;;  %s2218_s5 = sshll.u32 %s695_s29, 9  ;;  %v3004_v3 = vld [vmem:[%s3515_s1 + $0x20] sm:$0xff]   ;;  %v3019_v6 = vld [vmem:[%s3515_s1 + $0x18] sm:$0xff]   ;;  %v3028_v7 = vld [vmem:[%s3515_s1 + $0x10] sm:$0xff]   ;;  %p720_p8 = scmp.lt.s32.totalorder %s2219_s24, 63 }
  0x3b   : > { %2490 = vmatpush3.bf16.msra.mxu0 %v2705_v0  ;;  %2538 = vmatpush3.bf16.msra.mxu1 %v2705_v0  ;;  %s3008_s10 = scalar_lea.vmem [#allocation2], %s2218_s5  ;;  %v3037_v8 = vld [vmem:[%s3515_s1 + $0x8] sm:$0xff]   ;;  %v3046_v9 = vld [vmem:[%s3515_s1] sm:$0xff]  }
  0x3c   : > { %2491 = vmatprep.subr.bf16.mxu0 %v2706_v1  ;;  %2539 = vmatprep.subr.bf16.mxu1 %v2706_v1  ;;  %v2713_v4 = vld [vmem:[%s3008_s10] sm:$0xff]   ;;  %v2715_v10 = vld [vmem:[%s3008_s10 + $0x8] sm:$0xff]   ;;  %v2717_v12 = vld [vmem:[%s3008_s10 + $0x10] sm:$0xff]   ;;  %s3599_s24 = smov (!%p720_p8, %s2219_s24), 63 }
  0x3d   : > { %v2714_v5 = vld [vmem:[%s3008_s10 + $0x80] sm:$0xff]   ;;  %2505 = vmatprep.mubr.bf16.mxu0 %v2713_v4  ;;  %v2716_v11 = vld [vmem:[%s3008_s10 + $0x88] sm:$0xff]   ;;  %v2718_v13 = vld [vmem:[%s3008_s10 + $0x90] sm:$0xff]   ;;  %s2220_s25 = sshll.u32 %s3599_s24, 3 }
  0x3e   : > { %2553 = vmatprep.mubr.bf16.mxu1 %v2714_v5  ;;  %v2719_v14 = vld [vmem:[%s3008_s10 + $0x18] sm:$0xff]   ;;  %v2721_v16 = vld [vmem:[%s3008_s10 + $0x20] sm:$0xff]   ;;  %v2723_v18 = vld [vmem:[%s3008_s10 + $0x28] sm:$0xff]   ;;  %s3349_s28 = scalar_lea.vmem %s3517_s3, %s2220_s25 }
  0x3f   : > { %2492 = vmatpush3.bf16.msra.mxu0 %v2706_v1  ;;  %2540 = vmatpush3.bf16.msra.mxu1 %v2706_v1  ;;  %v2720_v15 = vld [vmem:[%s3008_s10 + $0x98] sm:$0xff]   ;;  %v2722_v17 = vld [vmem:[%s3008_s10 + $0xa0] sm:$0xff]   ;;  %v2724_v19 = vld [vmem:[%s3008_s10 + $0xa8] sm:$0xff]  }
  0x40   : > { %2493 = vmatprep.subr.bf16.mxu0 %v2999_v2  ;;  %2541 = vmatprep.subr.bf16.mxu1 %v2999_v2  ;;  %v2725_v20 = vld [vmem:[%s3008_s10 + $0x30] sm:$0xff]   ;;  %v2727_v22 = vld [vmem:[%s3008_s10 + $0x38] sm:$0xff]   ;;  %v2729_v24 = vld [vmem:[%s3008_s10 + $0x40] sm:$0xff]  }
  0x41   : > { %v2726_v21 = vld [vmem:[%s3008_s10 + $0xb0] sm:$0xff]   ;;  %v2728_v23 = vld [vmem:[%s3008_s10 + $0xb8] sm:$0xff]   ;;  %v2730_v25 = vld [vmem:[%s3008_s10 + $0xc0] sm:$0xff]  }
  0x42   : > { %v2731_v26 = vld [vmem:[%s3008_s10 + $0x48] sm:$0xff]   ;;  %v2733_v28 = vld [vmem:[%s3008_s10 + $0x50] sm:$0xff]   ;;  %v2735_v30 = vld [vmem:[%s3008_s10 + $0x58] sm:$0xff]  }
  0x43   : > { %2494 = vmatpush3.bf16.msra.mxu0 %v2999_v2  ;;  %2542 = vmatpush3.bf16.msra.mxu1 %v2999_v2  ;;  %v2732_v27 = vld [vmem:[%s3008_s10 + $0xc8] sm:$0xff]   ;;  %v2734_v29 = vld [vmem:[%s3008_s10 + $0xd0] sm:$0xff]   ;;  %v2736_v31 = vld [vmem:[%s3008_s10 + $0xd8] sm:$0xff]  }
  0x44   : > { %2495 = vmatprep.subr.bf16.mxu0 %v3004_v3  ;;  %2543 = vmatprep.subr.bf16.mxu1 %v3004_v3  ;;  %v2737_v32 = vld [vmem:[%s3008_s10 + $0x60] sm:$0xff]   ;;  %v2739_v34 = vld [vmem:[%s3008_s10 + $0x68] sm:$0xff]   ;;  %v2741_v36 = vld [vmem:[%s3008_s10 + $0x70] sm:$0xff]  }
  0x45   : > { %v2738_v33 = vld [vmem:[%s3008_s10 + $0xe0] sm:$0xff]   ;;  %v2740_v35 = vld [vmem:[%s3008_s10 + $0xe8] sm:$0xff]   ;;  %v2742_v37 = vld [vmem:[%s3008_s10 + $0xf0] sm:$0xff]  }
  0x46   : > { %v2743_v38 = vld [vmem:[%s3008_s10 + $0x78] sm:$0xff]   ;;  %v2745_v40 = vld [vmem:[%s3008_s10 + $0x100] sm:$0xff]   ;;  %v2747_v42 = vld [vmem:[%s3008_s10 + $0x108] sm:$0xff]  }
  0x47   : > { %2496 = vmatpush3.bf16.msra.mxu0 %v3004_v3  ;;  %2544 = vmatpush3.bf16.msra.mxu1 %v3004_v3  ;;  %v2744_v39 = vld [vmem:[%s3008_s10 + $0xf8] sm:$0xff]   ;;  %v2746_v41 = vld [vmem:[%s3008_s10 + $0x180] sm:$0xff]   ;;  %v2748_v43 = vld [vmem:[%s3008_s10 + $0x188] sm:$0xff]  }
  0x48   : > { %2497 = vmatprep.subr.bf16.mxu0 %v3019_v6  ;;  %2545 = vmatprep.subr.bf16.mxu1 %v3019_v6  ;;  %v2749_v44 = vld [vmem:[%s3008_s10 + $0x110] sm:$0xff]   ;;  %v2751_v46 = vld [vmem:[%s3008_s10 + $0x118] sm:$0xff]   ;;  %v2753_v48 = vld [vmem:[%s3008_s10 + $0x120] sm:$0xff]  }
  0x49   : > { %v2750_v45 = vld [vmem:[%s3008_s10 + $0x190] sm:$0xff]   ;;  %v2752_v47 = vld [vmem:[%s3008_s10 + $0x198] sm:$0xff]   ;;  %v2754_v49 = vld [vmem:[%s3008_s10 + $0x1a0] sm:$0xff]  }
  0x4a   : > { %v2755_v50 = vld [vmem:[%s3008_s10 + $0x128] sm:$0xff]   ;;  %v2757_v52 = vld [vmem:[%s3008_s10 + $0x130] sm:$0xff]   ;;  %v2759_v54 = vld [vmem:[%s3008_s10 + $0x138] sm:$0xff]  }
  0x4b   : > { %2498 = vmatpush3.bf16.msra.mxu0 %v3019_v6  ;;  %2546 = vmatpush3.bf16.msra.mxu1 %v3019_v6  ;;  %v2756_v51 = vld [vmem:[%s3008_s10 + $0x1a8] sm:$0xff]   ;;  %v2758_v53 = vld [vmem:[%s3008_s10 + $0x1b0] sm:$0xff]   ;;  %v2760_v55 = vld [vmem:[%s3008_s10 + $0x1b8] sm:$0xff]  }
  0x4c   : > { %2499 = vmatprep.subr.bf16.mxu0 %v3028_v7  ;;  %2547 = vmatprep.subr.bf16.mxu1 %v3028_v7  ;;  %v2761_v56 = vld [vmem:[%s3008_s10 + $0x140] sm:$0xff]   ;;  %v2763_v58 = vld [vmem:[%s3008_s10 + $0x148] sm:$0xff]   ;;  %v2765_v60 = vld [vmem:[%s3008_s10 + $0x150] sm:$0xff]  }
  0x4d   : > { %v2762_v57 = vld [vmem:[%s3008_s10 + $0x1c0] sm:$0xff]   ;;  %v2764_v59 = vld [vmem:[%s3008_s10 + $0x1c8] sm:$0xff]   ;;  %v2766_v61 = vld [vmem:[%s3008_s10 + $0x1d0] sm:$0xff]  }
  0x4e   : > { %v2767_v62 = vld [vmem:[%s3008_s10 + $0x158] sm:$0xff]   ;;  %v2773_v4 = vld [vmem:[%s3008_s10 + $0x170] sm:$0xff]  }
  0x4f   : > { %2500 = vmatpush3.bf16.msra.mxu0 %v3028_v7  ;;  %2548 = vmatpush3.bf16.msra.mxu1 %v3028_v7  ;;  %v2768_v63 = vld [vmem:[%s3008_s10 + $0x1d8] sm:$0xff]   ;;  %v2774_v5 = vld [vmem:[%s3008_s10 + $0x1f0] sm:$0xff]  }
  0x50   : > { %2501 = vmatprep.subr.bf16.mxu0 %v3037_v8  ;;  %2549 = vmatprep.subr.bf16.mxu1 %v3037_v8 }
  0x53   : > { %2502 = vmatpush3.bf16.msra.mxu0 %v3037_v8  ;;  %2550 = vmatpush3.bf16.msra.mxu1 %v3037_v8 }
  0x54   : > { %2503 = vmatprep.subr.bf16.mxu0 %v3046_v9  ;;  %2551 = vmatprep.subr.bf16.mxu1 %v3046_v9 }
  0x57   : > { %2504 = vmatpush3.bf16.msra.mxu0 %v3046_v9  ;;  %2552 = vmatpush3.bf16.msra.mxu1 %v3046_v9 }
  0x58   : > { %2585 = vmatprep.subr.bf16.mxu0 %v2705_v0  ;;  %2633 = vmatprep.subr.bf16.mxu1 %v2705_v0 }
  0x5a   : > { %2506 = vmatmul.mubr.bf16.vlgmr.msra.gmra.mxu0 %v2715_v10  ;;  %2554 = vmatmul.mubr.bf16.vlgmr.msra.gmra.mxu1 %v2716_v11 }
  0x5b   : > { %2586 = vmatpush3.bf16.msra.mxu0 %v2705_v0  ;;  %2634 = vmatpush3.bf16.msra.mxu1 %v2705_v0  ;;  %v2769_v0 = vld [vmem:[%s3008_s10 + $0x160] sm:$0xff]  }
  0x5c   : > { %2509 = vmatprep.mubr.bf16.mxu0 %v2717_v12  ;;  %2557 = vmatprep.mubr.bf16.mxu1 %v2718_v13 }
  0x5d   : > { %2587 = vmatprep.subr.bf16.mxu0 %v2706_v1  ;;  %2635 = vmatprep.subr.bf16.mxu1 %v2706_v1 }
  0x5f   : > { %2588 = vmatpush3.bf16.msra.mxu0 %v2706_v1  ;;  %2636 = vmatpush3.bf16.msra.mxu1 %v2706_v1  ;;  %v2770_v1 = vld [vmem:[%s3008_s10 + $0x1e0] sm:$0xff]  }
  0x60   : > { %2589 = vmatprep.subr.bf16.mxu0 %v2999_v2  ;;  %2637 = vmatprep.subr.bf16.mxu1 %v2999_v2 }
  0x62   : > { %2510 = vmatmul.mubr.bf16.gmra.mxu0 %v2719_v14  ;;  %2558 = vmatmul.mubr.bf16.gmra.mxu1 %v2720_v15 }
  0x63   : > { %2513 = vmatprep.mubr.bf16.mxu0 %v2721_v16  ;;  %2561 = vmatprep.mubr.bf16.mxu1 %v2722_v17 }
  0x64   : > { %2590 = vmatpush3.bf16.msra.mxu0 %v2999_v2  ;;  %2638 = vmatpush3.bf16.msra.mxu1 %v2999_v2  ;;  %v2771_v2 = vld [vmem:[%s3008_s10 + $0x168] sm:$0xff]  }
  0x65   : > { %2591 = vmatprep.subr.bf16.mxu0 %v3004_v3  ;;  %2639 = vmatprep.subr.bf16.mxu1 %v3004_v3 }
  0x68   : > { %2592 = vmatpush3.bf16.msra.mxu0 %v3004_v3  ;;  %2640 = vmatpush3.bf16.msra.mxu1 %v3004_v3  ;;  %v2772_v3 = vld [vmem:[%s3008_s10 + $0x1e8] sm:$0xff]  }
  0x69   : > { %2593 = vmatprep.subr.bf16.mxu0 %v3019_v6  ;;  %2641 = vmatprep.subr.bf16.mxu1 %v3019_v6 }
  0x6a   : > { %2514 = vmatmul.mubr.bf16.gmra.mxu0 %v2723_v18  ;;  %2562 = vmatmul.mubr.bf16.gmra.mxu1 %v2724_v19 }
  0x6b   : > { %2517 = vmatprep.mubr.bf16.mxu0 %v2725_v20  ;;  %2565 = vmatprep.mubr.bf16.mxu1 %v2726_v21 }
  0x6c   : > { %2594 = vmatpush3.bf16.msra.mxu0 %v3019_v6  ;;  %2642 = vmatpush3.bf16.msra.mxu1 %v3019_v6  ;;  %v2775_v6 = vld [vmem:[%s3008_s10 + $0x178] sm:$0xff]  }
  0x6d   : > { %2595 = vmatprep.subr.bf16.mxu0 %v3028_v7  ;;  %2643 = vmatprep.subr.bf16.mxu1 %v3028_v7 }
  0x70   : > { %2596 = vmatpush3.bf16.msra.mxu0 %v3028_v7  ;;  %2644 = vmatpush3.bf16.msra.mxu1 %v3028_v7  ;;  %v2776_v7 = vld [vmem:[%s3008_s10 + $0x1f8] sm:$0xff]  }
  0x71   : > { %2597 = vmatprep.subr.bf16.mxu0 %v3037_v8  ;;  %2645 = vmatprep.subr.bf16.mxu1 %v3037_v8 }
  0x72   : > { %2518 = vmatmul.mubr.bf16.gmra.mxu0 %v2727_v22  ;;  %2566 = vmatmul.mubr.bf16.gmra.mxu1 %v2728_v23 }
  0x73   : > { %2521 = vmatprep.mubr.bf16.mxu0 %v2729_v24  ;;  %2569 = vmatprep.mubr.bf16.mxu1 %v2730_v25 }
  0x74   : > { %2598 = vmatpush3.bf16.msra.mxu0 %v3037_v8  ;;  %2646 = vmatpush3.bf16.msra.mxu1 %v3037_v8 }
  0x75   : > { %2599 = vmatprep.subr.bf16.mxu0 %v3046_v9  ;;  %2647 = vmatprep.subr.bf16.mxu1 %v3046_v9 }
  0x78   : > { %2600 = vmatpush3.bf16.msra.mxu0 %v3046_v9  ;;  %2648 = vmatpush3.bf16.msra.mxu1 %v3046_v9 }
  0x7a   : > { %2522 = vmatmul.mubr.bf16.gmra.mxu0 %v2731_v26  ;;  %2570 = vmatmul.mubr.bf16.gmra.mxu1 %v2732_v27 }
  0x7b   : > { %2525 = vmatprep.mubr.bf16.mxu0 %v2733_v28  ;;  %2573 = vmatprep.mubr.bf16.mxu1 %v2734_v29 }
  0x82   : > { %2526 = vmatmul.mubr.bf16.gmra.mxu0 %v2735_v30  ;;  %2574 = vmatmul.mubr.bf16.gmra.mxu1 %v2736_v31 }
  0x83   : > { %2529 = vmatprep.mubr.bf16.mxu0 %v2737_v32  ;;  %2577 = vmatprep.mubr.bf16.mxu1 %v2738_v33 }
  0x8a   : > { %2530 = vmatmul.mubr.bf16.gmra.mxu0 %v2739_v34  ;;  %2578 = vmatmul.mubr.bf16.gmra.mxu1 %v2740_v35 }
  0x8b   : > { %2533 = vmatprep.mubr.bf16.mxu0 %v2741_v36  ;;  %2581 = vmatprep.mubr.bf16.mxu1 %v2742_v37 }
  0x92   : > { %2534 = vmatmul.mubr.bf16.gmra.mxu0 %v2743_v38  ;;  %2582 = vmatmul.mubr.bf16.gmra.mxu1 %v2744_v39 }
  0x93   : > { %2601 = vmatprep.mubr.bf16.mxu0 %v2745_v40  ;;  %2649 = vmatprep.mubr.bf16.mxu1 %v2746_v41 }
  0x9a   : > { %2602 = vmatmul.mubr.bf16.vlgmr.msra.gmra.mxu0 %v2747_v42  ;;  %2650 = vmatmul.mubr.bf16.vlgmr.msra.gmra.mxu1 %v2748_v43 }
  0x9b   : > { %2605 = vmatprep.mubr.bf16.mxu0 %v2749_v44  ;;  %2653 = vmatprep.mubr.bf16.mxu1 %v2750_v45 }
  0xa2   : > { %2606 = vmatmul.mubr.bf16.gmra.mxu0 %v2751_v46  ;;  %2654 = vmatmul.mubr.bf16.gmra.mxu1 %v2752_v47 }
  0xa3   : > { %2609 = vmatprep.mubr.bf16.mxu0 %v2753_v48  ;;  %2657 = vmatprep.mubr.bf16.mxu1 %v2754_v49 }
  0xaa   : > { %2610 = vmatmul.mubr.bf16.gmra.mxu0 %v2755_v50  ;;  %2658 = vmatmul.mubr.bf16.gmra.mxu1 %v2756_v51 }
  0xab   : > { %2613 = vmatprep.mubr.bf16.mxu0 %v2757_v52  ;;  %2661 = vmatprep.mubr.bf16.mxu1 %v2758_v53 }
  0xb2   : > { %2614 = vmatmul.mubr.bf16.gmra.mxu0 %v2759_v54  ;;  %2662 = vmatmul.mubr.bf16.gmra.mxu1 %v2760_v55 }
  0xb3   : > { %2617 = vmatprep.mubr.bf16.mxu0 %v2761_v56  ;;  %2665 = vmatprep.mubr.bf16.mxu1 %v2762_v57 }
  0xba   : > { %2618 = vmatmul.mubr.bf16.gmra.mxu0 %v2763_v58  ;;  %2666 = vmatmul.mubr.bf16.gmra.mxu1 %v2764_v59 }
  0xbb   : > { %2621 = vmatprep.mubr.bf16.mxu0 %v2765_v60  ;;  %2669 = vmatprep.mubr.bf16.mxu1 %v2766_v61 }
  0xc2   : > { %2622 = vmatmul.mubr.bf16.gmra.mxu0 %v2767_v62  ;;  %2670 = vmatmul.mubr.bf16.gmra.mxu1 %v2768_v63 }
  0xc3   : > { %2625 = vmatprep.mubr.bf16.mxu0 %v2769_v0  ;;  %2673 = vmatprep.mubr.bf16.mxu1 %v2770_v1 }
  0xca   : > { %2626 = vmatmul.mubr.bf16.gmra.mxu0 %v2771_v2  ;;  %2674 = vmatmul.mubr.bf16.gmra.mxu1 %v2772_v3 }
  0xcb   : > { %2629 = vmatprep.mubr.bf16.mxu0 %v2773_v4  ;;  %2677 = vmatprep.mubr.bf16.mxu1 %v2774_v5 }
  0xd2   : > { %2630 = vmatmul.mubr.bf16.gmra.mxu0 %v2775_v6  ;;  %2678 = vmatmul.mubr.bf16.gmra.mxu1 %v2776_v7  ;;  %v3337_v6 = vld [vmem:[%s3516_s2] ss:$0 sm:$0xff] }
 0x11a   : > { %v3140_v8 = vpop.f32.mrf.mxu0  ;;  %v3142_v9 = vpop.f32.mrf.mxu1 }
 0x11c   : > { %v3146_v11 = vpop.f32.mrf.mxu0  ;;  %v3148_v12 = vpop.f32.mrf.mxu1 }
 0x11e   : > { %v3152_v14 = vpop.f32.mrf.mxu0  ;;  %v3154_v15 = vpop.f32.mrf.mxu1 }
 0x120   : > { %v3158_v17 = vpop.f32.mrf.mxu0  ;;  %v3160_v18 = vpop.f32.mrf.mxu1 }
 0x122   : > { %v3164_v20 = vpop.f32.mrf.mxu0  ;;  %v3166_v21 = vpop.f32.mrf.mxu1 }
 0x124   : > { %v3170_v23 = vpop.f32.mrf.mxu0  ;;  %v3172_v24 = vpop.f32.mrf.mxu1 }
 0x126   : > { %v3176_v26 = vpop.f32.mrf.mxu0  ;;  %v3178_v27 = vpop.f32.mrf.mxu1 }
 0x128   : > { %v3182_v29 = vpop.f32.mrf.mxu0  ;;  %v3184_v30 = vpop.f32.mrf.mxu1 }
 0x12a   : > { %v3188_v32 = vpop.f32.mrf.mxu0  ;;  %v3190_v33 = vpop.f32.mrf.mxu1 }
 0x12c   : > { %v3194_v35 = vpop.f32.mrf.mxu0  ;;  %v3196_v36 = vpop.f32.mrf.mxu1 }
 0x12e   : > { %v3200_v38 = vpop.f32.mrf.mxu0  ;;  %v3202_v39 = vpop.f32.mrf.mxu1 }
 0x130   : > { %v3206_v41 = vpop.f32.mrf.mxu0  ;;  %v3208_v42 = vpop.f32.mrf.mxu1 }
 0x132   : > { %v3212_v44 = vpop.f32.mrf.mxu0  ;;  %v3214_v45 = vpop.f32.mrf.mxu1 }
 0x134   : > { %v3218_v47 = vpop.f32.mrf.mxu0  ;;  %v3220_v48 = vpop.f32.mrf.mxu1 }
 0x136   : > { %v3224_v50 = vpop.f32.mrf.mxu0  ;;  %v3226_v51 = vpop.f32.mrf.mxu1 }
 0x138   : > { %v3230_v53 = vpop.f32.mrf.mxu0  ;;  %v3232_v54 = vpop.f32.mrf.mxu1 }
 0x13a   : > { %v3236_v56 = vpop.f32.mrf.mxu0  ;;  %v3238_v57 = vpop.f32.mrf.mxu1 }
 0x13c   : > { %v3242_v59 = vpop.f32.mrf.mxu0  ;;  %v3244_v60 = vpop.f32.mrf.mxu1 }
 0x13e   : > { %v3248_v62 = vpop.f32.mrf.mxu0  ;;  %v3250_v63 = vpop.f32.mrf.mxu1 }
 0x140   : > { %v3254_v1 = vpop.f32.mrf.mxu0  ;;  %v3256_v2 = vpop.f32.mrf.mxu1 }
 0x142   : > { %v3260_v4 = vpop.f32.mrf.mxu0  ;;  %v3262_v5 = vpop.f32.mrf.mxu1 }
 0x144   : > { %v3266_v7 = vpop.f32.mrf.mxu0  ;;  %v3268_v61 = vpop.f32.mrf.mxu1 }
 0x146   : > { %v3272_v58 = vpop.f32.mrf.mxu0  ;;  %v3274_v55 = vpop.f32.mrf.mxu1 }
 0x148   : > { %v3278_v52 = vpop.f32.mrf.mxu0  ;;  %v3280_v49 = vpop.f32.mrf.mxu1 }
 0x14a   : > { %v3284_v46 = vpop.f32.mrf.mxu0  ;;  %v3286_v43 = vpop.f32.mrf.mxu1 }
 0x14b   : > { %3533 = vst [vmem:[#allocation3_spill] sm:$0xff] %v3286_v43 }
 0x14c   : > { %v3290_v40 = vpop.f32.mrf.mxu0  ;;  %v3292_v37 = vpop.f32.mrf.mxu1 }
 0x14d   : > { %3534 = vst [vmem:[#allocation4_spill] sm:$0xff] %v3290_v40  ;;  %3535 = vst [vmem:[#allocation5_spill] sm:$0xff] %v3292_v37 }
 0x14e   : > { %v3296_v34 = vpop.f32.mrf.mxu0  ;;  %v3298_v31 = vpop.f32.mrf.mxu1 }
 0x14f   : > { %3536 = vst [vmem:[#allocation6_spill] sm:$0xff] %v3296_v34  ;;  %3537 = vst [vmem:[#allocation7_spill] sm:$0xff] %v3298_v31 }
 0x150   : > { %v3302_v28 = vpop.f32.mrf.mxu0  ;;  %v3304_v25 = vpop.f32.mrf.mxu1 }
 0x151   : > { %3538 = vst [vmem:[#allocation8_spill] sm:$0xff] %v3302_v28  ;;  %3539 = vst [vmem:[#allocation9_spill] sm:$0xff] %v3304_v25  ;;  %v3548_v25 = vmax.f32 %v3140_v8, %v3142_v9 }
 0x152   : > { %v3308_v22 = vpop.f32.mrf.mxu0  ;;  %v3310_v19 = vpop.f32.mrf.mxu1 }
 0x153   : > { %3540 = vst [vmem:[#allocation10_spill] sm:$0xff] %v3308_v22  ;;  %3541 = vst [vmem:[#allocation11_spill] sm:$0xff] %v3310_v19 }
 0x154   : > { %v3316_v16 = vpop.f32.mrf.mxu0  ;;  %v3318_v13 = vpop.f32.mrf.mxu1 }
 0x155   : > { %3542 = vst [vmem:[#allocation12_spill] sm:$0xff] %v3316_v16  ;;  %3543 = vst [vmem:[#allocation13_spill] sm:$0xff] %v3318_v13 }
 0x156   : > { %v3322_v10 = vpop.f32.mrf.mxu0  ;;  %v3324_v0 = vpop.f32.mrf.mxu1 }
 0x157   : > { %3544 = vst [vmem:[#allocation14_spill] sm:$0xff] %v3322_v10  ;;  %3545 = vst [vmem:[#allocation15_spill] sm:$0xff] %v3324_v0 }
 0x158   : > { %v3328_v28 = vpop.f32.mrf.mxu0  ;;  %v3330_v31 = vpop.f32.mrf.mxu1 }
 0x159   : > { %3546 = vst [vmem:[#allocation16_spill] sm:$0xff] %v3328_v28  ;;  %3547 = vst [vmem:[#allocation17_spill] sm:$0xff] %v3330_v31 }
 0x15a   : > { %v2603_v19 = vpop.f32.mrf.mxu0  ;;  %v2651_v22 = vpop.f32.mrf.mxu1 }
 0x15b   : > { %v1983_v34 = vmax.f32 %v2603_v19, %v2651_v22  ;;  %v3549_v19 = vmax.f32 %v3146_v11, %v3148_v12 }
 0x15c   : > { %v1532_v13 = vpop.f32.mrf.mxu0  ;;  %v1822_v16 = vpop.f32.mrf.mxu1 }
 0x15d   : > { %v2015_v0 = vmax.f32 %v3548_v25, %v1983_v34  ;;  %v1981_v10 = vmax.f32 %v1532_v13, %v1822_v16  ;;  %v3550_v16 = vmax.f32 %v3152_v14, %v3154_v15  ;;  %v3552_v15 = vmax.f32 %v3164_v20, %v3166_v21 }
 0x15e   : > { %v2604_v37 = vpop.f32.mrf.mxu0  ;;  %v2652_v40 = vpop.f32.mrf.mxu1  ;;  %v3554_v21 = vmax.f32 %v3176_v26, %v3178_v27  ;;  %v3556_v27 = vmax.f32 %v3188_v32, %v3190_v33  ;;  %v3558_v33 = vmax.f32 %v3200_v38, %v3202_v39  ;;  %v3560_v39 = vmax.f32 %v3212_v44, %v3214_v45 }
 0x15f   : > { %v2054_v3 = vadd.f32 %v3337_v6, %v2015_v0  ;;  %v2013_v22 = vmax.f32 %v3549_v19, %v1981_v10  ;;  %v1984_v31 = vmax.f32 %v2604_v37, %v2652_v40  ;;  %v3551_v40 = vmax.f32 %v3158_v17, %v3160_v18 }
 0x160   : > { %v1535_v28 = vpop.f32.mrf.mxu0  ;;  %v1825_v8 = vpop.f32.mrf.mxu1  ;;  %v3553_v18 = vmax.f32 %v3170_v23, %v3172_v24  ;;  %v3555_v24 = vmax.f32 %v3182_v29, %v3184_v30  ;;  %v3557_v30 = vmax.f32 %v3194_v35, %v3196_v36  ;;  %v3559_v36 = vmax.f32 %v3206_v41, %v3208_v42 }
 0x161   : > { %v2086_v9 = vmax.f32 %v2054_v3, 0.0  ;;  %v2052_v13 = vadd.f32 %v3337_v6, %v2013_v22  ;;  %v2016_v25 = vmax.f32 %v3550_v16, %v1984_v31  ;;  %v1982_v34 = vmax.f32 %v1535_v28, %v1825_v8 }
 0x162   : > { %v2607_v11 = vpop.f32.mrf.mxu0  ;;  %v2655_v10 = vpop.f32.mrf.mxu1  ;;  %v3561_v42 = vmax.f32 %v3218_v47, %v3220_v48  ;;  %v3562_v45 = vmax.f32 %v3224_v50, %v3226_v51  ;;  %v3563_v48 = vmax.f32 %v3230_v53, %v3232_v54  ;;  %v3564_v51 = vmax.f32 %v3236_v56, %v3238_v57 }
 0x163   : > { %2118 = vst [vmem:[%s3349_s28 + $0x10] sm:$0xff] %v2086_v9  ;;  %v2084_v12 = vmax.f32 %v2052_v13, 0.0  ;;  %v2055_v37 = vadd.f32 %v3337_v6, %v2016_v25  ;;  %v2014_v0 = vmax.f32 %v3551_v40, %v1982_v34  ;;  %v1987_v19 = vmax.f32 %v2607_v11, %v2655_v10 }
 0x164   : > { %v1548_v3 = vpop.f32.mrf.mxu0  ;;  %v1838_v22 = vpop.f32.mrf.mxu1  ;;  %v3565_v54 = vmax.f32 %v3242_v59, %v3244_v60  ;;  %v3566_v57 = vmax.f32 %v3248_v62, %v3250_v63  ;;  %v3567_v60 = vmax.f32 %v3254_v1, %v3256_v2  ;;  %v3568_v63 = vmax.f32 %v3260_v4, %v3262_v5 }
 0x165   : > { %2116 = vst [vmem:[%s3349_s28] sm:$0xff] %v2084_v12  ;;  %v2087_v43 = vmax.f32 %v2055_v37, 0.0  ;;  %v2053_v14 = vadd.f32 %v3337_v6, %v2014_v0  ;;  %v2019_v28 = vmax.f32 %v3552_v15, %v1987_v19  ;;  %v1985_v31 = vmax.f32 %v1548_v3, %v1838_v22 }
 0x166   : > { %v2608_v8 = vpop.f32.mrf.mxu0  ;;  %v2656_v9 = vpop.f32.mrf.mxu1  ;;  %v3569_v2 = vmax.f32 %v3266_v7, %v3268_v61  ;;  %v3570_v5 = vmax.f32 %v3272_v58, %v3274_v55  ;;  %v3571_v7 = vmax.f32 %v3278_v52, %v3280_v49  ;;  %v3572_v58 = vld [vmem:[#allocation3_spill] sm:$0xff]  ;;  %v3574_v52 = vld [vmem:[#allocation4_spill] sm:$0xff] }
 0x167   : > { %2119 = vst [vmem:[%s3349_s28 + $0x18] sm:$0xff] %v2087_v43  ;;  %v2085_v13 = vmax.f32 %v2053_v14, 0.0  ;;  %v2058_v17 = vadd.f32 %v3337_v6, %v2019_v28  ;;  %v2017_v16 = vmax.f32 %v3553_v18, %v1985_v31  ;;  %v1988_v25 = vmax.f32 %v2608_v8, %v2656_v9 }
 0x168   : > { %v1551_v34 = vpop.f32.mrf.mxu0  ;;  %v1841_v11 = vpop.f32.mrf.mxu1 }
 0x169   : > { %2117 = vst [vmem:[%s3349_s28 + $0x8] sm:$0xff] %v2085_v13  ;;  %v2090_v10 = vmax.f32 %v2058_v17, 0.0  ;;  %v2056_v20 = vadd.f32 %v3337_v6, %v2017_v16  ;;  %v2020_v12 = vmax.f32 %v3554_v21, %v1988_v25  ;;  %v1986_v43 = vmax.f32 %v1551_v34, %v1841_v11 }
 0x16a   : > { %v2611_v37 = vpop.f32.mrf.mxu0  ;;  %v2659_v40 = vpop.f32.mrf.mxu1 }
 0x16b   : > { %2122 = vst [vmem:[%s3349_s28 + $0x30] sm:$0xff] %v2090_v10  ;;  %v2088_v0 = vmax.f32 %v2056_v20, 0.0  ;;  %v2059_v23 = vadd.f32 %v3337_v6, %v2020_v12  ;;  %v2018_v19 = vmax.f32 %v3555_v24, %v1986_v43  ;;  %v1991_v3 = vmax.f32 %v2611_v37, %v2659_v40 }
 0x16c   : > { %v1564_v22 = vpop.f32.mrf.mxu0  ;;  %v1854_v14 = vpop.f32.mrf.mxu1 }
 0x16d   : > { %2120 = vst [vmem:[%s3349_s28 + $0x20] sm:$0xff] %v2088_v0  ;;  %v2091_v15 = vmax.f32 %v2059_v23, 0.0  ;;  %v2057_v26 = vadd.f32 %v3337_v6, %v2018_v19  ;;  %v2023_v28 = vmax.f32 %v3556_v27, %v1991_v3  ;;  %v1989_v31 = vmax.f32 %v1564_v22, %v1854_v14 }
 0x16e   : > { %v2612_v8 = vpop.f32.mrf.mxu0  ;;  %v2660_v9 = vpop.f32.mrf.mxu1 }
 0x16f   : > { %2123 = vst [vmem:[%s3349_s28 + $0x38] sm:$0xff] %v2091_v15  ;;  %v2089_v13 = vmax.f32 %v2057_v26, 0.0  ;;  %v2062_v29 = vadd.f32 %v3337_v6, %v2023_v28  ;;  %v2021_v17 = vmax.f32 %v3557_v30, %v1989_v31  ;;  %v1992_v18 = vmax.f32 %v2612_v8, %v2660_v9 }
 0x170   : > { %v1567_v16 = vpop.f32.mrf.mxu0  ;;  %v1857_v25 = vpop.f32.mrf.mxu1 }
 0x171   : > { %2121 = vst [vmem:[%s3349_s28 + $0x28] sm:$0xff] %v2089_v13  ;;  %v2094_v34 = vmax.f32 %v2062_v29, 0.0  ;;  %v2060_v32 = vadd.f32 %v3337_v6, %v2021_v17  ;;  %v2024_v11 = vmax.f32 %v3558_v33, %v1992_v18  ;;  %v1990_v10 = vmax.f32 %v1567_v16, %v1857_v25 }
 0x172   : > { %v2615_v20 = vpop.f32.mrf.mxu0  ;;  %v2663_v21 = vpop.f32.mrf.mxu1 }
 0x173   : > { %2126 = vst [vmem:[%s3349_s28 + $0x50] sm:$0xff] %v2094_v34  ;;  %v2092_v12 = vmax.f32 %v2060_v32, 0.0  ;;  %v2063_v35 = vadd.f32 %v3337_v6, %v2024_v11  ;;  %v2022_v43 = vmax.f32 %v3559_v36, %v1990_v10  ;;  %v1995_v37 = vmax.f32 %v2615_v20, %v2663_v21 }
 0x174   : > { %v1580_v40 = vpop.f32.mrf.mxu0  ;;  %v1870_v0 = vpop.f32.mrf.mxu1 }
 0x175   : > { %2124 = vst [vmem:[%s3349_s28 + $0x40] sm:$0xff] %v2092_v12  ;;  %v2095_v23 = vmax.f32 %v2063_v35, 0.0  ;;  %v2061_v38 = vadd.f32 %v3337_v6, %v2022_v43  ;;  %v2027_v24 = vmax.f32 %v3560_v39, %v1995_v37  ;;  %v1993_v19 = vmax.f32 %v1580_v40, %v1870_v0 }
 0x176   : > { %v2616_v3 = vpop.f32.mrf.mxu0  ;;  %v2664_v22 = vpop.f32.mrf.mxu1 }
 0x177   : > { %2127 = vst [vmem:[%s3349_s28 + $0x58] sm:$0xff] %v2095_v23  ;;  %v2093_v14 = vmax.f32 %v2061_v38, 0.0  ;;  %v2066_v41 = vadd.f32 %v3337_v6, %v2027_v24  ;;  %v2025_v15 = vmax.f32 %v3561_v42, %v1993_v19  ;;  %v1996_v26 = vmax.f32 %v2616_v3, %v2664_v22 }
 0x178   : > { %v1583_v27 = vpop.f32.mrf.mxu0  ;;  %v1873_v28 = vpop.f32.mrf.mxu1 }
 0x179   : > { %2125 = vst [vmem:[%s3349_s28 + $0x48] sm:$0xff] %v2093_v14  ;;  %v2098_v31 = vmax.f32 %v2066_v41, 0.0  ;;  %v2064_v44 = vadd.f32 %v3337_v6, %v2025_v15  ;;  %v2028_v8 = vmax.f32 %v3562_v45, %v1996_v26  ;;  %v1994_v9 = vmax.f32 %v1583_v27, %v1873_v28 }
 0x17a   : > { %v2619_v13 = vpop.f32.mrf.mxu0  ;;  %v2667_v29 = vpop.f32.mrf.mxu1 }
 0x17b   : > { %2130 = vst [vmem:[%s3349_s28 + $0x70] sm:$0xff] %v2098_v31  ;;  %v2096_v30 = vmax.f32 %v2064_v44, 0.0  ;;  %v2067_v47 = vadd.f32 %v3337_v6, %v2028_v8  ;;  %v2026_v17 = vmax.f32 %v3563_v48, %v1994_v9  ;;  %v1999_v18 = vmax.f32 %v2619_v13, %v2667_v29 }
 0x17c   : > { %v1596_v16 = vpop.f32.mrf.mxu0  ;;  %v1886_v25 = vpop.f32.mrf.mxu1 }
 0x17d   : > { %2128 = vst [vmem:[%s3349_s28 + $0x60] sm:$0xff] %v2096_v30  ;;  %v2099_v34 = vmax.f32 %v2067_v47, 0.0  ;;  %v2065_v50 = vadd.f32 %v3337_v6, %v2026_v17  ;;  %v2031_v32 = vmax.f32 %v3564_v51, %v1999_v18  ;;  %v1997_v33 = vmax.f32 %v1596_v16, %v1886_v25 }
 0x17e   : > { %v2620_v11 = vpop.f32.mrf.mxu0  ;;  %v2668_v10 = vpop.f32.mrf.mxu1  ;;  %v3573_v25 = vmax.f32 %v3284_v46, %v3572_v58 }
 0x17f   : > { %2131 = vst [vmem:[%s3349_s28 + $0x78] sm:$0xff] %v2099_v34  ;;  %v2097_v20 = vmax.f32 %v2065_v50, 0.0  ;;  %v2070_v53 = vadd.f32 %v3337_v6, %v2031_v32  ;;  %v2029_v21 = vmax.f32 %v3565_v54, %v1997_v33  ;;  %v2000_v12 = vmax.f32 %v2620_v11, %v2668_v10  ;;  %v3575_v11 = vld [vmem:[#allocation5_spill] sm:$0xff] }
 0x180   : > { %v1599_v35 = vpop.f32.mrf.mxu0  ;;  %v1889_v36 = vpop.f32.mrf.mxu1  ;;  %v3576_v10 = vmax.f32 %v3574_v52, %v3575_v11 }
 0x181   : > { %2129 = vst [vmem:[%s3349_s28 + $0x68] sm:$0xff] %v2097_v20  ;;  %v2102_v43 = vmax.f32 %v2070_v53, 0.0  ;;  %v2068_v56 = vadd.f32 %v3337_v6, %v2029_v21  ;;  %v2032_v37 = vmax.f32 %v3566_v57, %v2000_v12  ;;  %v1998_v40 = vmax.f32 %v1599_v35, %v1889_v36  ;;  %v3577_v35 = vld [vmem:[#allocation6_spill] sm:$0xff]  ;;  %v3578_v36 = vld [vmem:[#allocation7_spill] sm:$0xff] }
 0x182   : > { %v2623_v0 = vpop.f32.mrf.mxu0  ;;  %v2671_v23 = vpop.f32.mrf.mxu1 }
 0x183   : > { %2134 = vst [vmem:[%s3349_s28 + $0x90] sm:$0xff] %v2102_v43  ;;  %v2100_v38 = vmax.f32 %v2068_v56, 0.0  ;;  %v2071_v59 = vadd.f32 %v3337_v6, %v2032_v37  ;;  %v2030_v39 = vmax.f32 %v3567_v60, %v1998_v40  ;;  %v2003_v24 = vmax.f32 %v2623_v0, %v2671_v23 }
 0x184   : > { %v1612_v19 = vpop.f32.mrf.mxu0  ;;  %v1902_v3 = vpop.f32.mrf.mxu1  ;;  %v3579_v43 = vmax.f32 %v3577_v35, %v3578_v36 }
 0x185   : > { %2132 = vst [vmem:[%s3349_s28 + $0x80] sm:$0xff] %v2100_v38  ;;  %v2103_v22 = vmax.f32 %v2071_v59, 0.0  ;;  %v2069_v62 = vadd.f32 %v3337_v6, %v2030_v39  ;;  %v2035_v14 = vmax.f32 %v3568_v63, %v2003_v24  ;;  %v2001_v41 = vmax.f32 %v1612_v19, %v1902_v3  ;;  %v3580_v38 = vld [vmem:[#allocation8_spill] sm:$0xff]  ;;  %v3581_v59 = vld [vmem:[#allocation9_spill] sm:$0xff]  ;;  %v3583_v63 = vld [vmem:[#allocation10_spill] sm:$0xff] }
 0x186   : > { %v2624_v42 = vpop.f32.mrf.mxu0  ;;  %v2672_v15 = vpop.f32.mrf.mxu1  ;;  %v3582_v60 = vmax.f32 %v3580_v38, %v3581_v59 }
 0x187   : > { %2135 = vst [vmem:[%s3349_s28 + $0x98] sm:$0xff] %v2103_v22  ;;  %v2101_v26 = vmax.f32 %v2069_v62, 0.0  ;;  %v2074_v1 = vadd.f32 %v3337_v6, %v2035_v14  ;;  %v2033_v27 = vmax.f32 %v3569_v2, %v2001_v41  ;;  %v2004_v28 = vmax.f32 %v2624_v42, %v2672_v15  ;;  %v3584_v14 = vld [vmem:[#allocation11_spill] sm:$0xff] }
 0x188   : > { %v1615_v31 = vpop.f32.mrf.mxu0  ;;  %v1905_v44 = vpop.f32.mrf.mxu1  ;;  %v3585_v41 = vmax.f32 %v3583_v63, %v3584_v14 }
 0x189   : > { %2133 = vst [vmem:[%s3349_s28 + $0x88] sm:$0xff] %v2101_v26  ;;  %v2106_v45 = vmax.f32 %v2074_v1, 0.0  ;;  %v2072_v4 = vadd.f32 %v3337_v6, %v2033_v27  ;;  %v2036_v8 = vmax.f32 %v3570_v5, %v2004_v28  ;;  %v2002_v9 = vmax.f32 %v1615_v31, %v1905_v44  ;;  %v3586_v28 = vld [vmem:[#allocation12_spill] sm:$0xff]  ;;  %v3587_v31 = vld [vmem:[#allocation13_spill] sm:$0xff] }
 0x18a   : > { %v2627_v13 = vpop.f32.mrf.mxu0  ;;  %v2675_v29 = vpop.f32.mrf.mxu1  ;;  %v3588_v44 = vmax.f32 %v3586_v28, %v3587_v31 }
 0x18b   : > { %2138 = vst [vmem:[%s3349_s28 + $0xb0] sm:$0xff] %v2106_v45  ;;  %v2104_v30 = vmax.f32 %v2072_v4, 0.0  ;;  %v2075_v61 = vadd.f32 %v3337_v6, %v2036_v8  ;;  %v2034_v47 = vmax.f32 %v3571_v7, %v2002_v9  ;;  %v2007_v48 = vmax.f32 %v2627_v13, %v2675_v29  ;;  %v3589_v29 = vld [vmem:[#allocation14_spill] sm:$0xff] }
 0x18c   : > { %v1628_v17 = vpop.f32.mrf.mxu0  ;;  %v1918_v18 = vpop.f32.mrf.mxu1 }
 0x18d   : > { %2136 = vst [vmem:[%s3349_s28 + $0xa0] sm:$0xff] %v2104_v30  ;;  %v2107_v16 = vmax.f32 %v2075_v61, 0.0  ;;  %v2073_v55 = vadd.f32 %v3337_v6, %v2034_v47  ;;  %v2039_v34 = vmax.f32 %v3573_v25, %v2007_v48  ;;  %v2005_v50 = vmax.f32 %v1628_v17, %v1918_v18  ;;  %v3590_v30 = vld [vmem:[#allocation15_spill] sm:$0xff]  ;;  %v3592_v18 = vld [vmem:[#allocation16_spill] sm:$0xff] }
 0x18e   : > { %v2628_v51 = vpop.f32.mrf.mxu0  ;;  %v2676_v32 = vpop.f32.mrf.mxu1  ;;  %v3591_v61 = vmax.f32 %v3589_v29, %v3590_v30 }
 0x18f   : > { %2139 = vst [vmem:[%s3349_s28 + $0xb8] sm:$0xff] %v2107_v16  ;;  %v2105_v33 = vmax.f32 %v2073_v55, 0.0  ;;  %v2078_v49 = vadd.f32 %v3337_v6, %v2039_v34  ;;  %v2037_v20 = vmax.f32 %v3576_v10, %v2005_v50  ;;  %v2008_v53 = vmax.f32 %v2628_v51, %v2676_v32  ;;  %v3593_v16 = vld [vmem:[#allocation17_spill] sm:$0xff] }
 0x190   : > { %v1631_v54 = vpop.f32.mrf.mxu0  ;;  %v1921_v21 = vpop.f32.mrf.mxu1  ;;  %v3594_v55 = vmax.f32 %v3592_v18, %v3593_v16 }
 0x191   : > { %2137 = vst [vmem:[%s3349_s28 + $0xa8] sm:$0xff] %v2105_v33  ;;  %v2110_v12 = vmax.f32 %v2078_v49, 0.0  ;;  %v2076_v46 = vadd.f32 %v3337_v6, %v2037_v20  ;;  %v2040_v56 = vmax.f32 %v3579_v43, %v2008_v53  ;;  %v2006_v57 = vmax.f32 %v1631_v54, %v1921_v21 }
 0x192   : > { %v2631_v37 = vpop.f32.mrf.mxu0  ;;  %v2679_v40 = vpop.f32.mrf.mxu1 }
 0x193   : > { %2142 = vst [vmem:[%s3349_s28 + $0xd0] sm:$0xff] %v2110_v12  ;;  %v2108_v0 = vmax.f32 %v2076_v46, 0.0  ;;  %v2079_v23 = vadd.f32 %v3337_v6, %v2040_v56  ;;  %v2038_v39 = vmax.f32 %v3582_v60, %v2006_v57  ;;  %v2011_v24 = vmax.f32 %v2631_v37, %v2679_v40 }
 0x194   : > { %v1644_v19 = vpop.f32.mrf.mxu0  ;;  %v1934_v3 = vpop.f32.mrf.mxu1 }
 0x195   : > { %2140 = vst [vmem:[%s3349_s28 + $0xc0] sm:$0xff] %v2108_v0  ;;  %v2111_v22 = vmax.f32 %v2079_v23, 0.0  ;;  %v2077_v62 = vadd.f32 %v3337_v6, %v2038_v39  ;;  %v2043_v42 = vmax.f32 %v3585_v41, %v2011_v24  ;;  %v2009_v15 = vmax.f32 %v1644_v19, %v1934_v3 }
 0x196   : > { %v2632_v26 = vpop.f32.mrf.mxu0  ;;  %v2680_v1 = vpop.f32.mrf.mxu1 }
 0x197   : > { %2143 = vst [vmem:[%s3349_s28 + $0xd8] sm:$0xff] %v2111_v22  ;;  %v2109_v2 = vmax.f32 %v2077_v62, 0.0  ;;  %v2082_v27 = vadd.f32 %v3337_v6, %v2043_v42  ;;  %v2041_v45 = vmax.f32 %v3588_v44, %v2009_v15  ;;  %v2012_v4 = vmax.f32 %v2632_v26, %v2680_v1 }
 0x198   : > { %v1647_v5 = vpop.f32.mrf.mxu0  ;;  %v1937_v8 = vpop.f32.mrf.mxu1 }
 0x199   : > { %2141 = vst [vmem:[%s3349_s28 + $0xc8] sm:$0xff] %v2109_v2  ;;  %v2114_v9 = vmax.f32 %v2082_v27, 0.0  ;;  %v2080_v13 = vadd.f32 %v3337_v6, %v2041_v45  ;;  %v2044_v7 = vmax.f32 %v3591_v61, %v2012_v4  ;;  %v2010_v47 = vmax.f32 %v1647_v5, %v1937_v8 }
 0x19b   : > { %2146 = vst [vmem:[%s3349_s28 + $0xf0] sm:$0xff] %v2114_v9  ;;  %v2112_v48 = vmax.f32 %v2080_v13, 0.0  ;;  %v2083_v17 = vadd.f32 %v3337_v6, %v2044_v7  ;;  %v2042_v58 = vmax.f32 %v3594_v55, %v2010_v47 }
 0x19d   : > { %2144 = vst [vmem:[%s3349_s28 + $0xe0] sm:$0xff] %v2112_v48  ;;  %v2115_v25 = vmax.f32 %v2083_v17, 0.0  ;;  %v2081_v34 = vadd.f32 %v3337_v6, %v2042_v58 }
 0x19f   : > { %2147 = vst [vmem:[%s3349_s28 + $0xf8] sm:$0xff] %v2115_v25  ;;  %v2113_v50 = vmax.f32 %v2081_v34, 0.0 }
 0x1a1   : > { %2145 = vst [vmem:[%s3349_s28 + $0xe8] sm:$0xff] %v2113_v50 }
 0x1a2 PF: > { %p10_p9 = scmp.ge.s32.totalorder %s2838_s16, 4   ;;  %s3595_s12 = smov %s2795_s13 }
 0x1a3   : > { %s3596_s13 = smov %s2847_s19  ;;  %s3597_s14 = smov %s2838_s16 }
 0x1a4   :  { %12 = sbr.rel (!%p10_p9) target bundleno = 2 (0x2), region = 111 }

// kernel: net_forward.4
= control target key start
LH: loop header
LB: loop body
LE: loop exit
PB: predicated region body
PF: predicated region fallthrough
CT: control target
= control target key end

     0   :  { %s1269_s1 = inlined_call_operand.vmem [shape: bf16[256,128], index: 1, kind: input, shape index: {}]   ;;  %s1270_s0 = inlined_call_operand.vmem [shape: bf16[4,64,256], index: 0, kind: input, shape index: {}]   ;;  %s1271_s2 = inlined_call_operand.vmem [shape: f32[1,128], index: 2, kind: input, shape index: {}]   ;;  %s1272_s3 = inlined_call_operand.vmem [shape: f32[64,128], index: 3, kind: output, shape index: {}]  }
   0x1   :  { %v890_v0 = vld [vmem:[%s1269_s1 + $0x78] sm:$0xff]   ;;  %v892_v2 = vld [vmem:[%s1269_s1 + $0x70] sm:$0xff]   ;;  %v894_v4 = vld [vmem:[%s1269_s1 + $0x68] sm:$0xff]  }
   0x2   :  { %v891_v1 = vld [vmem:[%s1269_s1 + $0x38] sm:$0xff]   ;;  %730 = vmatprep.subr.bf16.mxu0 %v890_v0  ;;  %770 = vmatprep.subr.bf16.mxu1 %v890_v0  ;;  %v893_v3 = vld [vmem:[%s1269_s1 + $0x30] sm:$0xff]   ;;  %v992_v5 = vld [vmem:[%s1269_s1 + $0x28] sm:$0xff]  }
   0x3   :  { %731 = vmatpush3.bf16.msra.mxu0 %v891_v1  ;;  %771 = vmatpush3.bf16.msra.mxu1 %v891_v1  ;;  %v997_v6 = vld [vmem:[%s1269_s1 + $0x60] sm:$0xff]   ;;  %v1011_v8 = vld [vmem:[%s1269_s1 + $0x58] sm:$0xff]   ;;  %v1025_v10 = vld [vmem:[%s1269_s1 + $0x50] sm:$0xff]  }
   0x4   :  { %732 = vmatprep.subr.bf16.mxu0 %v892_v2  ;;  %772 = vmatprep.subr.bf16.mxu1 %v892_v2  ;;  %v1004_v7 = vld [vmem:[%s1269_s1 + $0x20] sm:$0xff]   ;;  %v1018_v9 = vld [vmem:[%s1269_s1 + $0x18] sm:$0xff]   ;;  %v1038_v13 = vld [vmem:[%s1269_s1 + $0x10] sm:$0xff]  }
   0x5   :  { %v908_v11 = vld [vmem:[%s1270_s0 + $0x4] ss:$8 sps:$4 sm:$0xff]   ;;  %v906_v18 = vld [vmem:[%s1270_s0] ss:$8 sps:$4 sm:$0xff]   ;;  %v912_v20 = vld [vmem:[%s1270_s0 + $0x14] ss:$8 sps:$4 sm:$0xff]  }
   0x6   :  { %v911_v12 = vld [vmem:[%s1270_s0 + $0x44] ss:$8 sps:$4 sm:$0xff]   ;;  %223 = vmatprep.mubr.bf16.mxu0 %v908_v11  ;;  %v909_v19 = vld [vmem:[%s1270_s0 + $0x40] ss:$8 sps:$4 sm:$0xff]   ;;  %v914_v21 = vld [vmem:[%s1270_s0 + $0x54] ss:$8 sps:$4 sm:$0xff]  }
   0x7   :  { %733 = vmatpush3.bf16.msra.mxu0 %v893_v3  ;;  %773 = vmatpush3.bf16.msra.mxu1 %v893_v3  ;;  %v1045_v14 = vld [vmem:[%s1269_s1 + $0x48] sm:$0xff]   ;;  %v1059_v16 = vld [vmem:[%s1269_s1 + $0x40] sm:$0xff]   ;;  %v916_v22 = vld [vmem:[%s1270_s0 + $0x10] ss:$8 sps:$4 sm:$0xff]  }
   0x8   :  { %734 = vmatprep.subr.bf16.mxu0 %v894_v4  ;;  %774 = vmatprep.subr.bf16.mxu1 %v894_v4  ;;  %v1052_v15 = vld [vmem:[%s1269_s1 + $0x8] sm:$0xff]   ;;  %v1066_v17 = vld [vmem:[%s1269_s1] sm:$0xff]   ;;  %v917_v23 = vld [vmem:[%s1270_s0 + $0x50] ss:$8 sps:$4 sm:$0xff]  }
   0x9   :  { %337 = vmatprep.mubr.bf16.mxu1 %v911_v12  ;;  %v918_v24 = vld [vmem:[%s1270_s0 + $0x24] ss:$8 sps:$4 sm:$0xff]   ;;  %v922_v26 = vld [vmem:[%s1270_s0 + $0x20] ss:$8 sps:$4 sm:$0xff]   ;;  %v924_v28 = vld [vmem:[%s1270_s0 + $0x34] ss:$8 sps:$4 sm:$0xff]  }
   0xa   :  { %v920_v25 = vld [vmem:[%s1270_s0 + $0x64] ss:$8 sps:$4 sm:$0xff]   ;;  %v923_v27 = vld [vmem:[%s1270_s0 + $0x60] ss:$8 sps:$4 sm:$0xff]   ;;  %v926_v29 = vld [vmem:[%s1270_s0 + $0x74] ss:$8 sps:$4 sm:$0xff]  }
   0xb   :  { %735 = vmatpush3.bf16.msra.mxu0 %v992_v5  ;;  %775 = vmatpush3.bf16.msra.mxu1 %v992_v5  ;;  %v928_v30 = vld [vmem:[%s1270_s0 + $0x30] ss:$8 sps:$4 sm:$0xff]   ;;  %v932_v32 = vld [vmem:[%s1270_s0 + $0x84] ss:$8 sps:$4 sm:$0xff]   ;;  %v930_v34 = vld [vmem:[%s1270_s0 + $0x80] ss:$8 sps:$4 sm:$0xff]  }
   0xc   :  { %736 = vmatprep.subr.bf16.mxu0 %v997_v6  ;;  %776 = vmatprep.subr.bf16.mxu1 %v997_v6  ;;  %v929_v31 = vld [vmem:[%s1270_s0 + $0x70] ss:$8 sps:$4 sm:$0xff]   ;;  %v935_v33 = vld [vmem:[%s1270_s0 + $0xc4] ss:$8 sps:$4 sm:$0xff]   ;;  %v933_v35 = vld [vmem:[%s1270_s0 + $0xc0] ss:$8 sps:$4 sm:$0xff]  }
   0xd   :  { %v936_v36 = vld [vmem:[%s1270_s0 + $0x94] ss:$8 sps:$4 sm:$0xff]   ;;  %v940_v38 = vld [vmem:[%s1270_s0 + $0x90] ss:$8 sps:$4 sm:$0xff]   ;;  %v942_v40 = vld [vmem:[%s1270_s0 + $0xa4] ss:$8 sps:$4 sm:$0xff]  }
   0xe   :  { %v938_v37 = vld [vmem:[%s1270_s0 + $0xd4] ss:$8 sps:$4 sm:$0xff]   ;;  %v941_v39 = vld [vmem:[%s1270_s0 + $0xd0] ss:$8 sps:$4 sm:$0xff]   ;;  %v944_v41 = vld [vmem:[%s1270_s0 + $0xe4] ss:$8 sps:$4 sm:$0xff]  }
   0xf   :  { %737 = vmatpush3.bf16.msra.mxu0 %v1004_v7  ;;  %777 = vmatpush3.bf16.msra.mxu1 %v1004_v7  ;;  %v946_v42 = vld [vmem:[%s1270_s0 + $0xa0] ss:$8 sps:$4 sm:$0xff]   ;;  %v948_v44 = vld [vmem:[%s1270_s0 + $0xb4] ss:$8 sps:$4 sm:$0xff]   ;;  %v952_v46 = vld [vmem:[%s1270_s0 + $0xb0] ss:$8 sps:$4 sm:$0xff]  }
  0x10   :  { %738 = vmatprep.subr.bf16.mxu0 %v1011_v8  ;;  %778 = vmatprep.subr.bf16.mxu1 %v1011_v8  ;;  %v947_v43 = vld [vmem:[%s1270_s0 + $0xe0] ss:$8 sps:$4 sm:$0xff]   ;;  %v950_v45 = vld [vmem:[%s1270_s0 + $0xf4] ss:$8 sps:$4 sm:$0xff]   ;;  %v953_v47 = vld [vmem:[%s1270_s0 + $0xf0] ss:$8 sps:$4 sm:$0xff]  }
  0x13   :  { %739 = vmatpush3.bf16.msra.mxu0 %v1018_v9  ;;  %779 = vmatpush3.bf16.msra.mxu1 %v1018_v9 }
  0x14   :  { %740 = vmatprep.subr.bf16.mxu0 %v1025_v10  ;;  %780 = vmatprep.subr.bf16.mxu1 %v1025_v10 }
  0x17   :  { %741 = vmatpush3.bf16.msra.mxu0 %v1038_v13  ;;  %781 = vmatpush3.bf16.msra.mxu1 %v1038_v13 }
  0x18   :  { %742 = vmatprep.subr.bf16.mxu0 %v1045_v14  ;;  %782 = vmatprep.subr.bf16.mxu1 %v1045_v14 }
  0x1b   :  { %743 = vmatpush3.bf16.msra.mxu0 %v1052_v15  ;;  %783 = vmatpush3.bf16.msra.mxu1 %v1052_v15 }
  0x1c   :  { %744 = vmatprep.subr.bf16.mxu0 %v1059_v16  ;;  %784 = vmatprep.subr.bf16.mxu1 %v1059_v16 }
  0x1f   :  { %745 = vmatpush3.bf16.msra.mxu0 %v1066_v17  ;;  %785 = vmatpush3.bf16.msra.mxu1 %v1066_v17 }
  0x20   :  { %810 = vmatprep.subr.bf16.mxu0 %v890_v0  ;;  %850 = vmatprep.subr.bf16.mxu1 %v890_v0 }
  0x22   :  { %224 = vmatmul.mubr.bf16.vlgmr.msra.gmra.mxu0 %v906_v18  ;;  %338 = vmatmul.mubr.bf16.vlgmr.msra.gmra.mxu1 %v909_v19 }
  0x23   :  { %811 = vmatpush3.bf16.msra.mxu0 %v891_v1  ;;  %851 = vmatpush3.bf16.msra.mxu1 %v891_v1 }
  0x24   :  { %812 = vmatprep.subr.bf16.mxu0 %v892_v2  ;;  %852 = vmatprep.subr.bf16.mxu1 %v892_v2 }
  0x25   :  { %231 = vmatprep.mubr.bf16.mxu0 %v912_v20  ;;  %345 = vmatprep.mubr.bf16.mxu1 %v914_v21 }
  0x27   :  { %813 = vmatpush3.bf16.msra.mxu0 %v893_v3  ;;  %853 = vmatpush3.bf16.msra.mxu1 %v893_v3 }
  0x28   :  { %814 = vmatprep.subr.bf16.mxu0 %v894_v4  ;;  %854 = vmatprep.subr.bf16.mxu1 %v894_v4 }
  0x2a   :  { %232 = vmatmul.mubr.bf16.gmra.mxu0 %v916_v22  ;;  %346 = vmatmul.mubr.bf16.gmra.mxu1 %v917_v23 }
  0x2b   :  { %815 = vmatpush3.bf16.msra.mxu0 %v992_v5  ;;  %855 = vmatpush3.bf16.msra.mxu1 %v992_v5 }
  0x2c   :  { %816 = vmatprep.subr.bf16.mxu0 %v997_v6  ;;  %856 = vmatprep.subr.bf16.mxu1 %v997_v6 }
  0x2d   :  { %239 = vmatprep.mubr.bf16.mxu0 %v918_v24  ;;  %353 = vmatprep.mubr.bf16.mxu1 %v920_v25 }
  0x2f   :  { %817 = vmatpush3.bf16.msra.mxu0 %v1004_v7  ;;  %857 = vmatpush3.bf16.msra.mxu1 %v1004_v7 }
  0x30   :  { %818 = vmatprep.subr.bf16.mxu0 %v1011_v8  ;;  %858 = vmatprep.subr.bf16.mxu1 %v1011_v8 }
  0x32   :  { %240 = vmatmul.mubr.bf16.gmra.mxu0 %v922_v26  ;;  %354 = vmatmul.mubr.bf16.gmra.mxu1 %v923_v27 }
  0x33   :  { %819 = vmatpush3.bf16.msra.mxu0 %v1018_v9  ;;  %859 = vmatpush3.bf16.msra.mxu1 %v1018_v9 }
  0x34   :  { %820 = vmatprep.subr.bf16.mxu0 %v1025_v10  ;;  %860 = vmatprep.subr.bf16.mxu1 %v1025_v10 }
  0x35   :  { %247 = vmatprep.mubr.bf16.mxu0 %v924_v28  ;;  %361 = vmatprep.mubr.bf16.mxu1 %v926_v29 }
  0x37   :  { %821 = vmatpush3.bf16.msra.mxu0 %v1038_v13  ;;  %861 = vmatpush3.bf16.msra.mxu1 %v1038_v13 }
  0x38   :  { %822 = vmatprep.subr.bf16.mxu0 %v1045_v14  ;;  %862 = vmatprep.subr.bf16.mxu1 %v1045_v14 }
  0x3a   :  { %248 = vmatmul.mubr.bf16.gmra.mxu0 %v928_v30  ;;  %362 = vmatmul.mubr.bf16.gmra.mxu1 %v929_v31  ;;  %v1219_v30 = vld [vmem:[%s1271_s2] ss:$0 sm:$0xff] }
  0x3b   :  { %823 = vmatpush3.bf16.msra.mxu0 %v1052_v15  ;;  %863 = vmatpush3.bf16.msra.mxu1 %v1052_v15 }
  0x3c   :  { %824 = vmatprep.subr.bf16.mxu0 %v1059_v16  ;;  %864 = vmatprep.subr.bf16.mxu1 %v1059_v16 }
  0x3d   :  { %451 = vmatprep.mubr.bf16.mxu0 %v932_v32  ;;  %565 = vmatprep.mubr.bf16.mxu1 %v935_v33 }
  0x3f   :  { %825 = vmatpush3.bf16.msra.mxu0 %v1066_v17  ;;  %865 = vmatpush3.bf16.msra.mxu1 %v1066_v17 }
  0x42   :  { %452 = vmatmul.mubr.bf16.vlgmr.msra.gmra.mxu0 %v930_v34  ;;  %566 = vmatmul.mubr.bf16.vlgmr.msra.gmra.mxu1 %v933_v35 }
  0x43   :  { %459 = vmatprep.mubr.bf16.mxu0 %v936_v36  ;;  %573 = vmatprep.mubr.bf16.mxu1 %v938_v37 }
  0x4a   :  { %460 = vmatmul.mubr.bf16.gmra.mxu0 %v940_v38  ;;  %574 = vmatmul.mubr.bf16.gmra.mxu1 %v941_v39 }
  0x4b   :  { %467 = vmatprep.mubr.bf16.mxu0 %v942_v40  ;;  %581 = vmatprep.mubr.bf16.mxu1 %v944_v41 }
  0x52   :  { %468 = vmatmul.mubr.bf16.gmra.mxu0 %v946_v42  ;;  %582 = vmatmul.mubr.bf16.gmra.mxu1 %v947_v43 }
  0x53   :  { %475 = vmatprep.mubr.bf16.mxu0 %v948_v44  ;;  %589 = vmatprep.mubr.bf16.mxu1 %v950_v45 }
  0x5a   :  { %476 = vmatmul.mubr.bf16.gmra.mxu0 %v952_v46  ;;  %590 = vmatmul.mubr.bf16.gmra.mxu1 %v953_v47 }
  0xe2   :  { %v746_v48 = vpop.f32.mrf.mxu0  ;;  %v786_v49 = vpop.f32.mrf.mxu1 }
  0xe4   :  { %v747_v50 = vpop.f32.mrf.mxu0  ;;  %v787_v51 = vpop.f32.mrf.mxu1 }
  0xe5   :  { %v748_v18 = vadd.f32 %v747_v50, %v746_v48  ;;  %v788_v19 = vadd.f32 %v787_v51, %v786_v49 }
  0xe6   :  { %v749_v52 = vpop.f32.mrf.mxu0  ;;  %v789_v53 = vpop.f32.mrf.mxu1 }
  0xe7   :  { %v598_v26 = vmax.f32 %v748_v18, %v788_v19 }
  0xe8   :  { %v750_v54 = vpop.f32.mrf.mxu0  ;;  %v790_v55 = vpop.f32.mrf.mxu1 }
  0xe9   :  { %v751_v27 = vadd.f32 %v750_v54, %v749_v52  ;;  %v791_v28 = vadd.f32 %v790_v55, %v789_v53 }
  0xea   :  { %v752_v56 = vpop.f32.mrf.mxu0  ;;  %v792_v57 = vpop.f32.mrf.mxu1 }
  0xeb   :  { %v599_v40 = vmax.f32 %v751_v27, %v791_v28 }
  0xec   :  { %v753_v58 = vpop.f32.mrf.mxu0  ;;  %v793_v59 = vpop.f32.mrf.mxu1 }
  0xed   :  { %v754_v36 = vadd.f32 %v753_v58, %v752_v56  ;;  %v794_v37 = vadd.f32 %v793_v59, %v792_v57 }
  0xee   :  { %v755_v60 = vpop.f32.mrf.mxu0  ;;  %v795_v61 = vpop.f32.mrf.mxu1 }
  0xef   :  { %v600_v49 = vmax.f32 %v754_v36, %v794_v37 }
  0xf0   :  { %v756_v62 = vpop.f32.mrf.mxu0  ;;  %v796_v63 = vpop.f32.mrf.mxu1 }
  0xf1   :  { %v757_v52 = vadd.f32 %v756_v62, %v755_v60  ;;  %v797_v53 = vadd.f32 %v796_v63, %v795_v61 }
  0xf2   :  { %v1184_v0 = vpop.f32.mrf.mxu0  ;;  %v1186_v1 = vpop.f32.mrf.mxu1 }
  0xf3   :  { %v601_v63 = vmax.f32 %v757_v52, %v797_v53 }
  0xf4   :  { %v1188_v2 = vpop.f32.mrf.mxu0  ;;  %v1190_v3 = vpop.f32.mrf.mxu1 }
  0xf5   :  { %v760_v18 = vadd.f32 %v1188_v2, %v1184_v0  ;;  %v800_v60 = vadd.f32 %v1190_v3, %v1186_v1 }
  0xf6   :  { %v1192_v4 = vpop.f32.mrf.mxu0  ;;  %v1194_v5 = vpop.f32.mrf.mxu1 }
  0xf7   :  { %v602_v0 = vmax.f32 %v760_v18, %v800_v60 }
  0xf8   :  { %v1196_v6 = vpop.f32.mrf.mxu0  ;;  %v1198_v7 = vpop.f32.mrf.mxu1 }
  0xf9   :  { %v763_v1 = vadd.f32 %v1196_v6, %v1192_v4  ;;  %v803_v3 = vadd.f32 %v1198_v7, %v1194_v5 }
  0xfa   :  { %v1200_v8 = vpop.f32.mrf.mxu0  ;;  %v1202_v9 = vpop.f32.mrf.mxu1 }
  0xfb   :  { %v603_v7 = vmax.f32 %v763_v1, %v803_v3 }
  0xfc   :  { %v1204_v10 = vpop.f32.mrf.mxu0  ;;  %v1206_v11 = vpop.f32.mrf.mxu1 }
  0xfd   :  { %v766_v37 = vadd.f32 %v1204_v10, %v1200_v8  ;;  %v806_v4 = vadd.f32 %v1206_v11, %v1202_v9 }
  0xfe   :  { %v1208_v12 = vpop.f32.mrf.mxu0  ;;  %v1210_v13 = vpop.f32.mrf.mxu1 }
  0xff   :  { %v604_v8 = vmax.f32 %v766_v37, %v806_v4 }
 0x100   :  { %v1212_v14 = vpop.f32.mrf.mxu0  ;;  %v1214_v15 = vpop.f32.mrf.mxu1 }
 0x101   :  { %v769_v9 = vadd.f32 %v1212_v14, %v1208_v12  ;;  %v809_v11 = vadd.f32 %v1214_v15, %v1210_v13 }
 0x102   :  { %v826_v16 = vpop.f32.mrf.mxu0  ;;  %v866_v17 = vpop.f32.mrf.mxu1 }
 0x104   :  { %v827_v20 = vpop.f32.mrf.mxu0  ;;  %v867_v21 = vpop.f32.mrf.mxu1 }
 0x105   :  { %v828_v22 = vadd.f32 %v827_v20, %v826_v16  ;;  %v868_v23 = vadd.f32 %v867_v21, %v866_v17 }
 0x106   :  { %v829_v24 = vpop.f32.mrf.mxu0  ;;  %v869_v25 = vpop.f32.mrf.mxu1 }
 0x107   :  { %v606_v29 = vmax.f32 %v828_v22, %v868_v23 }
 0x108   :  { %v830_v31 = vpop.f32.mrf.mxu0  ;;  %v870_v32 = vpop.f32.mrf.mxu1 }
 0x109   :  { %v614_v33 = vmax.f32 %v598_v26, %v606_v29  ;;  %v831_v34 = vadd.f32 %v830_v31, %v829_v24  ;;  %v871_v35 = vadd.f32 %v870_v32, %v869_v25 }
 0x10a   :  { %v832_v38 = vpop.f32.mrf.mxu0  ;;  %v872_v39 = vpop.f32.mrf.mxu1 }
 0x10b   :  { %v629_v41 = vadd.f32 %v1219_v30, %v614_v33  ;;  %v607_v42 = vmax.f32 %v831_v34, %v871_v35 }
 0x10c   :  { %v833_v43 = vpop.f32.mrf.mxu0  ;;  %v873_v44 = vpop.f32.mrf.mxu1 }
 0x10d   :  { %v637_v45 = vmax.f32 %v629_v41, 0.0  ;;  %v615_v46 = vmax.f32 %v599_v40, %v607_v42  ;;  %v834_v47 = vadd.f32 %v833_v43, %v832_v38  ;;  %v874_v48 = vadd.f32 %v873_v44, %v872_v39 }
 0x10e   :  { %v835_v50 = vpop.f32.mrf.mxu0  ;;  %v875_v51 = vpop.f32.mrf.mxu1 }
 0x10f   :  { %645 = vst [vmem:[%s1272_s3] sm:$0xff] %v637_v45  ;;  %v630_v54 = vadd.f32 %v1219_v30, %v615_v46  ;;  %v608_v55 = vmax.f32 %v834_v47, %v874_v48 }
 0x110   :  { %v836_v56 = vpop.f32.mrf.mxu0  ;;  %v876_v57 = vpop.f32.mrf.mxu1 }
 0x111   :  { %v638_v58 = vmax.f32 %v630_v54, 0.0  ;;  %v616_v59 = vmax.f32 %v600_v49, %v608_v55  ;;  %v837_v16 = vadd.f32 %v836_v56, %v835_v50  ;;  %v877_v17 = vadd.f32 %v876_v57, %v875_v51 }
 0x112   :  { %v838_v61 = vpop.f32.mrf.mxu0  ;;  %v878_v62 = vpop.f32.mrf.mxu1  ;;  %v605_v55 = vmax.f32 %v769_v9, %v809_v11 }
 0x113   :  { %646 = vst [vmem:[%s1272_s3 + $0x8] sm:$0xff] %v638_v58  ;;  %v631_v19 = vadd.f32 %v1219_v30, %v616_v59  ;;  %v609_v20 = vmax.f32 %v837_v16, %v877_v17 }
 0x114   :  { %v839_v21 = vpop.f32.mrf.mxu0  ;;  %v879_v22 = vpop.f32.mrf.mxu1 }
 0x115   :  { %v639_v23 = vmax.f32 %v631_v19, 0.0  ;;  %v617_v24 = vmax.f32 %v601_v63, %v609_v20  ;;  %v840_v25 = vadd.f32 %v839_v21, %v838_v61  ;;  %v880_v26 = vadd.f32 %v879_v22, %v878_v62 }
 0x116   :  { %v841_v2 = vpop.f32.mrf.mxu0  ;;  %v881_v27 = vpop.f32.mrf.mxu1 }
 0x117   :  { %647 = vst [vmem:[%s1272_s3 + $0x10] sm:$0xff] %v639_v23  ;;  %v632_v28 = vadd.f32 %v1219_v30, %v617_v24  ;;  %v610_v29 = vmax.f32 %v840_v25, %v880_v26 }
 0x118   :  { %v842_v31 = vpop.f32.mrf.mxu0  ;;  %v882_v32 = vpop.f32.mrf.mxu1 }
 0x119   :  { %v640_v33 = vmax.f32 %v632_v28, 0.0  ;;  %v618_v34 = vmax.f32 %v602_v0, %v610_v29  ;;  %v843_v35 = vadd.f32 %v842_v31, %v841_v2  ;;  %v883_v36 = vadd.f32 %v882_v32, %v881_v27 }
 0x11a   :  { %v844_v5 = vpop.f32.mrf.mxu0  ;;  %v884_v6 = vpop.f32.mrf.mxu1 }
 0x11b   :  { %648 = vst [vmem:[%s1272_s3 + $0x18] sm:$0xff] %v640_v33  ;;  %v633_v38 = vadd.f32 %v1219_v30, %v618_v34  ;;  %v611_v39 = vmax.f32 %v843_v35, %v883_v36 }
 0x11c   :  { %v845_v40 = vpop.f32.mrf.mxu0  ;;  %v885_v41 = vpop.f32.mrf.mxu1 }
 0x11d   :  { %v641_v42 = vmax.f32 %v633_v38, 0.0  ;;  %v619_v43 = vmax.f32 %v603_v7, %v611_v39  ;;  %v846_v44 = vadd.f32 %v845_v40, %v844_v5  ;;  %v886_v45 = vadd.f32 %v885_v41, %v884_v6 }
 0x11e   :  { %v847_v10 = vpop.f32.mrf.mxu0  ;;  %v887_v46 = vpop.f32.mrf.mxu1 }
 0x11f   :  { %649 = vst [vmem:[%s1272_s3 + $0x20] sm:$0xff] %v641_v42  ;;  %v634_v47 = vadd.f32 %v1219_v30, %v619_v43  ;;  %v612_v48 = vmax.f32 %v846_v44, %v886_v45 }
 0x120   :  { %v848_v49 = vpop.f32.mrf.mxu0  ;;  %v888_v50 = vpop.f32.mrf.mxu1 }
 0x121   :  { %v642_v51 = vmax.f32 %v634_v47, 0.0  ;;  %v620_v52 = vmax.f32 %v604_v8, %v612_v48  ;;  %v849_v53 = vadd.f32 %v848_v49, %v847_v10  ;;  %v889_v54 = vadd.f32 %v888_v50, %v887_v46 }
 0x123   :  { %650 = vst [vmem:[%s1272_s3 + $0x28] sm:$0xff] %v642_v51  ;;  %v635_v12 = vadd.f32 %v1219_v30, %v620_v52  ;;  %v613_v13 = vmax.f32 %v849_v53, %v889_v54 }
 0x125   :  { %v643_v14 = vmax.f32 %v635_v12, 0.0  ;;  %v621_v15 = vmax.f32 %v605_v55, %v613_v13 }
 0x127   :  { %651 = vst [vmem:[%s1272_s3 + $0x30] sm:$0xff] %v643_v14  ;;  %v636_v56 = vadd.f32 %v1219_v30, %v621_v15 }
 0x129   :  { %v644_v57 = vmax.f32 %v636_v56, 0.0 }
 0x12b   :  { %652 = vst [vmem:[%s1272_s3 + $0x38] sm:$0xff] %v644_v57 }

// kernel: net_forward.5
= control target key start
LH: loop header
LB: loop body
LE: loop exit
PB: predicated region body
PF: predicated region fallthrough
CT: control target
= control target key end

     0   :  { %v845_v34 = vmov 0.0   ;;  %vm846_vm0 = vmmov 0   ;;  %s1076_s1 = inlined_call_operand.vmem [shape: bf16[512,128], index: 1, kind: input, shape index: {}]   ;;  %s1077_s0 = inlined_call_operand.vmem [shape: bf16[16,512], index: 0, kind: input, shape index: {}]   ;;  %s1078_s3 = inlined_call_operand.vmem [shape: bf16[128,128], index: 3, kind: input, shape index: {}]   ;;  %s1079_s5 = inlined_call_operand.vmem [shape: bf16[128,128], index: 5, kind: input, shape index: {}]   ;;  %s1080_s2 = inlined_call_operand.vmem [shape: f32[1,128], index: 2, kind: input, shape index: {}]   ;;  %s1081_s4 = inlined_call_operand.vmem [shape: f32[1,128], index: 4, kind: input, shape index: {}]   ;;  %s1082_s6 = inlined_call_operand.vmem [shape: f32[1,128], index: 6, kind: input, shape index: {}]   ;;  %s1083_s7 = inlined_call_operand.vmem [shape: f32[16,128], index: 7, kind: output, shape index: {}]  }
   0x1   :  { %v791_v0 = vld [vmem:[%s1076_s1 + $0x78] sm:$0xff]   ;;  %v795_v4 = vld [vmem:[%s1076_s1 + $0x70] sm:$0xff]   ;;  %v799_v8 = vld [vmem:[%s1076_s1 + $0x68] sm:$0xff]  }
   0x2   :  { %v792_v1 = vld [vmem:[%s1076_s1 + $0xf8] sm:$0xff]   ;;  %687 = vmatprep.subr.bf16.mxu0 %v791_v0  ;;  %v796_v5 = vld [vmem:[%s1076_s1 + $0xf0] sm:$0xff]   ;;  %v800_v9 = vld [vmem:[%s1076_s1 + $0xe8] sm:$0xff]  }
   0x3   :  { %v793_v2 = vld [vmem:[%s1076_s1 + $0x38] sm:$0xff]   ;;  %709 = vmatprep.subr.bf16.mxu1 %v792_v1  ;;  %v797_v6 = vld [vmem:[%s1076_s1 + $0x30] sm:$0xff]   ;;  %v801_v10 = vld [vmem:[%s1076_s1 + $0x28] sm:$0xff]  }
   0x4   :  { %v794_v3 = vld [vmem:[%s1076_s1 + $0xb8] sm:$0xff]   ;;  %688 = vmatpush3.bf16.msra.mxu0 %v793_v2  ;;  %v798_v7 = vld [vmem:[%s1076_s1 + $0xb0] sm:$0xff]   ;;  %v802_v11 = vld [vmem:[%s1076_s1 + $0xa8] sm:$0xff]  }
   0x5   :  { %710 = vmatpush3.bf16.msra.mxu1 %v794_v3  ;;  %689 = vmatprep.subr.bf16.mxu0 %v795_v4  ;;  %v803_v12 = vld [vmem:[%s1076_s1 + $0x60] sm:$0xff]   ;;  %v807_v16 = vld [vmem:[%s1076_s1 + $0x58] sm:$0xff]   ;;  %v811_v20 = vld [vmem:[%s1076_s1 + $0x50] sm:$0xff]  }
   0x6   :  { %711 = vmatprep.subr.bf16.mxu1 %v796_v5  ;;  %v804_v13 = vld [vmem:[%s1076_s1 + $0xe0] sm:$0xff]   ;;  %v808_v17 = vld [vmem:[%s1076_s1 + $0xd8] sm:$0xff]   ;;  %v812_v21 = vld [vmem:[%s1076_s1 + $0xd0] sm:$0xff]  }
   0x7   :  { %v805_v14 = vld [vmem:[%s1076_s1 + $0x20] sm:$0xff]   ;;  %v809_v18 = vld [vmem:[%s1076_s1 + $0x18] sm:$0xff]   ;;  %v813_v22 = vld [vmem:[%s1076_s1 + $0x10] sm:$0xff]  }
   0x8   :  { %690 = vmatpush3.bf16.msra.mxu0 %v797_v6  ;;  %v806_v15 = vld [vmem:[%s1076_s1 + $0xa0] sm:$0xff]   ;;  %v810_v19 = vld [vmem:[%s1076_s1 + $0x98] sm:$0xff]   ;;  %v814_v23 = vld [vmem:[%s1076_s1 + $0x90] sm:$0xff]  }
   0x9   :  { %712 = vmatpush3.bf16.msra.mxu1 %v798_v7  ;;  %691 = vmatprep.subr.bf16.mxu0 %v799_v8  ;;  %v815_v24 = vld [vmem:[%s1076_s1 + $0x48] sm:$0xff]   ;;  %v819_v28 = vld [vmem:[%s1076_s1 + $0x40] sm:$0xff]   ;;  %v829_v37 = vld [vmem:[%s1078_s3 + $0x38] sm:$0xff]  }
   0xa   :  { %713 = vmatprep.subr.bf16.mxu1 %v800_v9  ;;  %v816_v25 = vld [vmem:[%s1076_s1 + $0xc8] sm:$0xff]   ;;  %v820_v29 = vld [vmem:[%s1076_s1 + $0xc0] sm:$0xff]   ;;  %v830_v38 = vld [vmem:[%s1078_s3 + $0x30] sm:$0xff]  }
   0xb   :  { %v817_v26 = vld [vmem:[%s1076_s1 + $0x8] sm:$0xff]   ;;  %v821_v30 = vld [vmem:[%s1076_s1] sm:$0xff]   ;;  %v833_v41 = vld [vmem:[%s1078_s3 + $0x18] sm:$0xff]  }
   0xc   :  { %692 = vmatpush3.bf16.msra.mxu0 %v801_v10  ;;  %v818_v27 = vld [vmem:[%s1076_s1 + $0x88] sm:$0xff]   ;;  %v822_v31 = vld [vmem:[%s1076_s1 + $0x80] sm:$0xff]   ;;  %v834_v42 = vld [vmem:[%s1078_s3 + $0x10] sm:$0xff]  }
   0xd   :  { %714 = vmatpush3.bf16.msra.mxu1 %v802_v11  ;;  %693 = vmatprep.subr.bf16.mxu0 %v803_v12  ;;  %v823_v32 = vld [vmem:[%s1077_s0] ss:$16 sps:$4 sm:$0xff]   ;;  %v825_v33 = vld [vmem:[%s1077_s0 + $0x4] ss:$16 sps:$4 sm:$0xff]   ;;  %v826_v35 = vld [vmem:[%s1077_s0 + $0x8] ss:$16 sps:$4 sm:$0xff]  }
   0xe   :  { %715 = vmatprep.subr.bf16.mxu1 %v804_v13  ;;  %v828_v36 = vld [vmem:[%s1077_s0 + $0xc] ss:$16 sps:$4 sm:$0xff]   ;;  %346 = vmatprep.mubr.bf16.mxu0 %v825_v33  ;;  %v832_v40 = vld [vmem:[%s1078_s3 + $0x20] sm:$0xff]   ;;  %v838_v46 = vld [vmem:[%s1079_s5 + $0x30] sm:$0xff]  }
   0xf   :  { %387 = vmatprep.mubr.bf16.mxu1 %v828_v36  ;;  %v831_v39 = vld [vmem:[%s1078_s3 + $0x28] sm:$0xff]   ;;  %v836_v44 = vld [vmem:[%s1078_s3] sm:$0xff]   ;;  %v837_v45 = vld [vmem:[%s1079_s5 + $0x38] sm:$0xff]  }
  0x10   :  { %694 = vmatpush3.bf16.msra.mxu0 %v805_v14  ;;  %v835_v43 = vld [vmem:[%s1078_s3 + $0x8] sm:$0xff]   ;;  %v840_v48 = vld [vmem:[%s1079_s5 + $0x20] sm:$0xff]   ;;  %v841_v49 = vld [vmem:[%s1079_s5 + $0x18] sm:$0xff]  }
  0x11   :  { %716 = vmatpush3.bf16.msra.mxu1 %v806_v15  ;;  %695 = vmatprep.subr.bf16.mxu0 %v807_v16  ;;  %v839_v47 = vld [vmem:[%s1079_s5 + $0x28] sm:$0xff]   ;;  %v632_v52 = vld [vmem:[%s1080_s2] ss:$0 sm:$0xff]  ;;  %v842_v6 = vld [vmem:[%s1079_s5 + $0x10] sm:$0xff]  }
  0x12   :  { %717 = vmatprep.subr.bf16.mxu1 %v808_v17  ;;  %v843_v7 = vld [vmem:[%s1079_s5 + $0x8] sm:$0xff]   ;;  %v844_v8 = vld [vmem:[%s1079_s5] sm:$0xff]  }
  0x13   :  { %v669_v9 = vld [vmem:[%s1081_s4] ss:$0 sm:$0xff] }
  0x14   :  { %696 = vmatpush3.bf16.msra.mxu0 %v809_v18 }
  0x15   :  { %718 = vmatpush3.bf16.msra.mxu1 %v810_v19  ;;  %697 = vmatprep.subr.bf16.mxu0 %v811_v20  ;;  %v678_v19 = vld [vmem:[%s1082_s6] ss:$0 sm:$0xff] }
  0x16   :  { %719 = vmatprep.subr.bf16.mxu1 %v812_v21 }
  0x18   :  { %698 = vmatpush3.bf16.msra.mxu0 %v813_v22 }
  0x19   :  { %720 = vmatpush3.bf16.msra.mxu1 %v814_v23  ;;  %699 = vmatprep.subr.bf16.mxu0 %v815_v24 }
  0x1a   :  { %721 = vmatprep.subr.bf16.mxu1 %v816_v25 }
  0x1c   :  { %700 = vmatpush3.bf16.msra.mxu0 %v817_v26 }
  0x1d   :  { %722 = vmatpush3.bf16.msra.mxu1 %v818_v27  ;;  %701 = vmatprep.subr.bf16.mxu0 %v819_v28 }
  0x1e   :  { %723 = vmatprep.subr.bf16.mxu1 %v820_v29 }
  0x20   :  { %702 = vmatpush3.bf16.msra.mxu0 %v821_v30 }
  0x21   :  { %724 = vmatpush3.bf16.msra.mxu1 %v822_v31  ;;  %749 = vmatprep.subr.bf16.mxu0 %v845_v34 }
  0x22   :  { %769 = vmatprep.subr.bf16.mxu1 %v845_v34 }
  0x23   :  { %347 = vmatmul.mubr.bf16.vlgmr.msra.gmra.mxu0 %v823_v32 }
  0x24   :  { %388 = vmatmul.mubr.bf16.vlgmr.msra.gmra.mxu1 %v826_v35  ;;  %750 = vmatpush3.bf16.msra.mxu0 %v829_v37 }
  0x25   :  { %751 = vmatprep.subr.bf16.mxu0 %v845_v34  ;;  %765 = vmatprep.mubr.msk.bf16.mxu0 %vm846_vm0, %v845_v34 }
  0x26   :  { %785 = vmatprep.mubr.msk.bf16.mxu1 %vm846_vm0, %v845_v34  ;;  %770 = vmatpush3.bf16.msra.mxu1 %v837_v45 }
  0x27   :  { %771 = vmatprep.subr.bf16.mxu1 %v845_v34 }
  0x28   :  { %752 = vmatpush3.bf16.msra.mxu0 %v830_v38 }
  0x29   :  { %753 = vmatprep.subr.bf16.mxu0 %v845_v34 }
  0x2a   :  { %772 = vmatpush3.bf16.msra.mxu1 %v838_v46 }
  0x2b   :  { %773 = vmatprep.subr.bf16.mxu1 %v845_v34 }
  0x2c   :  { %754 = vmatpush3.bf16.msra.mxu0 %v831_v39 }
  0x2d   :  { %755 = vmatprep.subr.bf16.mxu0 %v845_v34 }
  0x2e   :  { %774 = vmatpush3.bf16.msra.mxu1 %v839_v47 }
  0x2f   :  { %775 = vmatprep.subr.bf16.mxu1 %v845_v34 }
  0x30   :  { %756 = vmatpush3.bf16.msra.mxu0 %v832_v40 }
  0x31   :  { %757 = vmatprep.subr.bf16.mxu0 %v845_v34 }
  0x32   :  { %776 = vmatpush3.bf16.msra.mxu1 %v840_v48 }
  0x33   :  { %777 = vmatprep.subr.bf16.mxu1 %v845_v34 }
  0x34   :  { %758 = vmatpush3.bf16.msra.mxu0 %v833_v41 }
  0x35   :  { %759 = vmatprep.subr.bf16.mxu0 %v845_v34 }
  0x36   :  { %778 = vmatpush3.bf16.msra.mxu1 %v841_v49 }
  0x37   :  { %779 = vmatprep.subr.bf16.mxu1 %v845_v34 }
  0x38   :  { %760 = vmatpush3.bf16.msra.mxu0 %v834_v42 }
  0x39   :  { %761 = vmatprep.subr.bf16.mxu0 %v845_v34 }
  0x3a   :  { %780 = vmatpush3.bf16.msra.mxu1 %v842_v6 }
  0x3b   :  { %781 = vmatprep.subr.bf16.mxu1 %v845_v34 }
  0x3c   :  { %762 = vmatpush3.bf16.msra.mxu0 %v835_v43 }
  0x3d   :  { %763 = vmatprep.subr.bf16.mxu0 %v845_v34 }
  0x3e   :  { %782 = vmatpush3.bf16.msra.mxu1 %v843_v7 }
  0x3f   :  { %783 = vmatprep.subr.bf16.mxu1 %v845_v34 }
  0x40   :  { %764 = vmatpush3.bf16.msra.mxu0 %v836_v44 }
  0x42   :  { %784 = vmatpush3.bf16.msra.mxu1 %v844_v8 }
  0xe3   :  { %v703_v50 = vpop.f32.mrf.mxu0 }
  0xe4   :  { %v725_v51 = vpop.f32.mrf.mxu1 }
  0xe5   :  { %v704_v53 = vpop.f32.mrf.mxu0 }
  0xe6   :  { %v705_v54 = vadd.f32 %v704_v53, %v703_v50  ;;  %v726_v55 = vpop.f32.mrf.mxu1 }
  0xe7   :  { %v706_v56 = vpop.f32.mrf.mxu0  ;;  %v727_v60 = vadd.f32 %v726_v55, %v725_v51 }
  0xe8   :  { %v349_v57 = vadd.f32 %v705_v54, %v632_v52  ;;  %v728_v58 = vpop.f32.mrf.mxu1 }
  0xe9   :  { %v707_v59 = vpop.f32.mrf.mxu0 }
  0xea   :  { %v708_v61 = vadd.f32 %v707_v59, %v706_v56  ;;  %v729_v62 = vpop.f32.mrf.mxu1  ;;  %v390_v63 = vadd.f32 %v727_v60, %v349_v57 }
  0xeb   :  { %v730_v1 = vadd.f32 %v729_v62, %v728_v58 }
  0xec   :  { %v352_v0 = vadd.f32 %v708_v61, %v632_v52  ;;  %v396_v3 = vmax.f32 %v390_v63, 0.0 }
  0xee   :  { %v393_v2 = vadd.f32 %v730_v1, %v352_v0 }
  0xf0   :  { %v397_v4 = vmax.f32 %v393_v2, 0.0 }
  0xf2   :  { %v398_v5 = vpack.c.bf16 %v397_v4, %v396_v3 }
  0xf4   :  { %766 = vmatmul.mubr.bf16.vlgmr.msra.gmra.mxu0 %v398_v5 }
 0x1b4   :  { %v504_v10 = vpop.f32.mrf.mxu0 }
 0x1b5   :  { %v505_v12 = vadd.f32 %v669_v9, %v504_v10 }
 0x1b6   :  { %v767_v11 = vpop.f32.mrf.mxu0 }
 0x1b7   :  { %v511_v16 = vmax.f32 %v505_v12, 0.0 }
 0x1b8   :  { %v507_v13 = vpop.f32.mrf.mxu0 }
 0x1b9   :  { %v508_v14 = vadd.f32 %v669_v9, %v507_v13 }
 0x1ba   :  { %v768_v15 = vpop.f32.mrf.mxu0 }
 0x1bb   :  { %v512_v17 = vmax.f32 %v508_v14, 0.0 }
 0x1bd   :  { %v513_v18 = vpack.c.bf16 %v512_v17, %v511_v16 }
 0x1bf   :  { %786 = vmatmul.mubr.bf16.vlgmr.msra.gmra.mxu1 %v513_v18 }
 0x27f   :  { %v619_v20 = vpop.f32.mrf.mxu1 }
 0x280   :  { %v620_v21 = vadd.f32 %v678_v19, %v619_v20 }
 0x281   :  { %v787_v22 = vpop.f32.mrf.mxu1 }
 0x282   :  { %626 = vst [vmem:[%s1083_s7] sm:$0xff] %v620_v21 }
 0x283   :  { %v622_v23 = vpop.f32.mrf.mxu1 }
 0x284   :  { %v623_v24 = vadd.f32 %v678_v19, %v622_v23 }
 0x285   :  { %v788_v25 = vpop.f32.mrf.mxu1 }
 0x286   :  { %627 = vst [vmem:[%s1083_s7 + $0x8] sm:$0xff] %v623_v24 }

</bundles_post_ra>
